<compile_context>
chip_gen: v6e
topology: v6e:2x2x1
jax: 0.10.0
libtpu: 0.0.40
codegen_flags: <defaults>
</compile_context>

<pallas_src>
import functools

import jax
import jax.numpy as jnp
from jax.experimental import pallas as pl
from jax.experimental.pallas import tpu as pltpu


def _round_up(x, m):
    return ((x + m - 1) // m) * m


def lstm_recurrence_kernel(x_ref, w_ih_ref, w_hh_ref, b_ref,
                           h_out_ref, h_scr, c_scr, zx_scr, *, unroll):
    """Fused input projection + LSTM recurrence for one (batch, time) block.

    x_ref    : (Tt, Bt, E)      inputs for this block (f32)
    w_ih_ref : (E, 4*Hp)        input weights, transposed & gate-padded
    w_hh_ref : (Hp, 4*Hp)       recurrent weights, transposed & gate-padded
    b_ref    : (1, 4*Hp)        b_ih + b_hh, gate-padded (f32)
    h_out_ref: (Tt, Bt, Hp)     per-step hidden states (output)
    h_scr/c_scr: (Bt, Hp) f32   recurrent state, persists across time blocks
    zx_scr   : (Tt*Bt, 4*Hp) f32  per-block x-projection staging buffer
    """
    Tt, Bt, E = x_ref.shape
    Hp = h_scr.shape[-1]
    mxu_dtype = w_ih_ref.dtype        # bf16 on the v6e/v7x fast path, else f32

    # New batch tile => reset the recurrent state (time is grid axis 1, serial).
    @pl.when(pl.program_id(1) == 0)
    def _():
        h_scr[...] = jnp.zeros_like(h_scr)
        c_scr[...] = jnp.zeros_like(c_scr)

    # Fused input projection (no serial dependence): one batched MXU matmul
    # over all Tt timesteps of this block, instead of streaming a precomputed
    # (Tt, Bt, 4Hp) f32 intermediate from HBM.
    x2d = x_ref[...].reshape(Tt * Bt, E).astype(mxu_dtype)
    zx_scr[...] = (jnp.dot(x2d, w_ih_ref[...],
                           preferred_element_type=jnp.float32) + b_ref[...])

    # Hoist the weight load out of the loop; at large Hp consider
    # pipeline_mode=pl.Buffered(1) on this input to drop its second buffer.
    w_hh = w_hh_ref[...]

    def step(tt, carry):
        h, c = carry
        row = pl.multiple_of(tt * Bt, 8)
        # Only the h-dependent matmul remains inside the recurrence.
        z = zx_scr[pl.ds(row, Bt), :] + jnp.dot(
            h.astype(mxu_dtype), w_hh, preferred_element_type=jnp.float32)
        # Lane-aligned gate slices (Hp is a multiple of 128); order i, f, g, o.
        i_g = jax.nn.sigmoid(z[:, 0 * Hp:1 * Hp])
        f_g = jax.nn.sigmoid(z[:, 1 * Hp:2 * Hp])
        g_g = jnp.tanh(z[:, 2 * Hp:3 * Hp])
        o_g = jax.nn.sigmoid(z[:, 3 * Hp:4 * Hp])
        c_new = f_g * c + i_g * g_g
        h_new = o_g * jnp.tanh(c_new)
        h_out_ref[tt] = h_new.astype(h_out_ref.dtype)
        return (h_new, c_new)

    # Partial unroll: cross-step MXU/EUP/VPU overlap with bounded vreg pressure.
    h, c = jax.lax.fori_loop(0, Tt, step, (h_scr[...], c_scr[...]),
                             unroll=unroll)
    h_scr[...] = h
    c_scr[...] = c


def decoder_rnn_forward(features, captions, params, *,
                        time_block=32, batch_block=128,
                        unroll=4, use_bf16=False):
    """features: (B, E) f32, captions: (B, T) int32 -> logits (B, T, V) f32."""
    embed_w = params["embed_w"]          # (vocab, E)
    w_ih = params["w_ih"]                # (4H, E)  gates stacked [i; f; g; o]
    w_hh = params["w_hh"]                # (4H, H)
    b_ih = params["b_ih"]                # (4H,)
    b_hh = params["b_hh"]                # (4H,)
    w_fc = params["w_fc"]                # (V, H)
    b_fc = params["b_fc"]                # (V,)

    B, T = captions.shape
    E = embed_w.shape[1]
    H = w_hh.shape[1]
    V = w_fc.shape[0]
    f32 = jnp.float32
    mxu_dtype = jnp.bfloat16 if use_bf16 else f32   # matmul-operand / hs dtype

    # ---- hardware-friendly padded sizes -------------------------------------
    Hp = _round_up(H, 128)                           # lane-aligned gate slices
    Bt = _round_up(min(int(batch_block), B), 8)      # batch tile (sublane mult)
    Bp = _round_up(B, Bt)
    Tt = max(1, min(int(time_block), T))             # timesteps per grid step
    Tp = _round_up(T, Tt)
    n_batch_blocks = Bp // Bt
    n_time_blocks = Tp // Tt
    unroll = max(1, min(int(unroll), Tt))
    # NOTE(v7x): when deployment batch allows, pick Bt so n_batch_blocks >= 2,
    # otherwise one of the two TensorCores idles on the recurrence.

    # ---- glue (plain JAX): embedding gather + feature concat ----------------
    embeddings = jnp.take(embed_w, captions, axis=0)                 # (B, T, E)
    inputs = jnp.concatenate([features[:, None, :],
                              embeddings[:, :-1, :]], axis=1)        # (B, T, E)
    x_tm = jnp.transpose(inputs, (1, 0, 2)).astype(f32)              # (T, B, E)
    x_tm = jnp.pad(x_tm, ((0, Tp - T), (0, Bp - B), (0, 0)))         # (Tp,Bp,E)

    # ---- LSTM weights: gate-major, each gate padded H -> Hp, transposed -----
    def pad_gates(w, in_dim, in_pad):
        w4 = w.reshape(4, H, in_dim).astype(f32)
        w4 = jnp.pad(w4, ((0, 0), (0, Hp - H), (0, in_pad - in_dim)))
        return w4.reshape(4 * Hp, in_pad)

    w_ih_t = pad_gates(w_ih, E, E).T.astype(mxu_dtype)               # (E, 4Hp)
    w_hh_t = pad_gates(w_hh, H, Hp).T.astype(mxu_dtype)              # (Hp, 4Hp)
    b_p = jnp.pad((b_ih + b_hh).astype(f32).reshape(4, H),
                  ((0, 0), (0, Hp - H))).reshape(1, 4 * Hp)          # (1, 4Hp)

    # ---- VMEM budget for this tiling (double-buffered streams + scratch) ----
    wsz = jnp.dtype(mxu_dtype).itemsize
    osz = jnp.dtype(mxu_dtype).itemsize
    vmem_est = (2 * Tt * Bt * E * 4              # x blocks (f32 stream)
                + 2 * Tt * Bt * Hp * osz         # hidden-state out blocks
                + 2 * E * 4 * Hp * wsz           # w_ih (double buffered)
                + 2 * Hp * 4 * Hp * wsz          # w_hh (double buffered)
                + 2 * 4 * Hp * 4                 # bias
                + Tt * Bt * 4 * Hp * 4           # zx scratch
                + 2 * Bt * Hp * 4)               # h / c scratch
    vmem_limit = max(32 << 20, min(int(vmem_est * 3 // 2) + (4 << 20), 100 << 20))

    # ---- Pallas recurrence: emits hidden states (Tp, Bp, Hp) -----------------
    hs_tm = pl.pallas_call(
        functools.partial(lstm_recurrence_kernel, unroll=unroll),
        out_shape=jax.ShapeDtypeStruct((Tp, Bp, Hp), mxu_dtype),
        grid_spec=pltpu.PrefetchScalarGridSpec(
            num_scalar_prefetch=0,
            grid=(n_batch_blocks, n_time_blocks),   # batch outer, time inner
            in_specs=[
                # streamed inputs for this (batch, time) block
                pl.BlockSpec((Tt, Bt, E), lambda b, t: (t, b, 0)),
                # constant weights / bias (small here; for large Hp add
                # pipeline_mode=pl.Buffered(1) to drop the second buffer)
                pl.BlockSpec((E, 4 * Hp), lambda b, t: (0, 0)),
                pl.BlockSpec((Hp, 4 * Hp), lambda b, t: (0, 0)),
                pl.BlockSpec((1, 4 * Hp), lambda b, t: (0, 0)),
            ],
            out_specs=pl.BlockSpec((Tt, Bt, Hp), lambda b, t: (t, b, 0)),
            scratch_shapes=[
                pltpu.VMEM((Bt, Hp), f32),              # h (persists over time)
                pltpu.VMEM((Bt, Hp), f32),              # c
                pltpu.VMEM((Tt * Bt, 4 * Hp), f32),     # fused x-projection
            ],
        ),
        compiler_params=pltpu.CompilerParams(
            # batch tiles are independent (megacore on v7x); the time axis is
            # the serial recurrence and MUST stay "arbitrary" and innermost.
            dimension_semantics=("parallel", "arbitrary"),
            vmem_limit_bytes=vmem_limit,
        ),
    )(x_tm, w_ih_t, w_hh_t, b_p)

    # ---- hoisted fc projection: one big (B*T, H) matmul ----------------------
    hs = jnp.transpose(hs_tm[:T, :B, :H], (1, 0, 2))                 # (B, T, H)
    logits = jnp.dot(hs.reshape(B * T, H), w_fc.T.astype(hs.dtype),
                     preferred_element_type=f32) + b_fc.astype(f32)
    return logits.reshape(B, T, V)


def _reference_forward(features, captions, params):
    """Pure-JAX f32 reference (lax.scan) mirroring torch semantics."""
    embed_w = params["embed_w"]
    w_ih, w_hh = params["w_ih"], params["w_hh"]
    b = params["b_ih"] + params["b_hh"]
    w_fc, b_fc = params["w_fc"], params["b_fc"]
    H = w_hh.shape[1]

    embeddings = jnp.take(embed_w, captions, axis=0)
    inputs = jnp.concatenate([features[:, None, :], embeddings[:, :-1, :]], axis=1)
    x_tm = jnp.transpose(inputs, (1, 0, 2))

    def step(carry, x):
        h, c = carry
        z = x @ w_ih.T + h @ w_hh.T + b
        i, f, g, o = jnp.split(z, 4, axis=-1)
        i, f, o = jax.nn.sigmoid(i), jax.nn.sigmoid(f), jax.nn.sigmoid(o)
        g = jnp.tanh(g)
        c = f * c + i * g
        h = o * jnp.tanh(c)
        return (h, c), h

    B = features.shape[0]
    h0 = jnp.zeros((B, H), jnp.float32)
    _, hs = jax.lax.scan(step, (h0, h0), x_tm)
    return jnp.transpose(hs @ w_fc.T + b_fc, (1, 0, 2))


if __name__ == "__main__":
    # Small deterministic config; T=10 with time_block=4 exercises time padding
    # and the h/c carry across multiple time blocks.
    B, T = 2, 10
    embed_dim, hidden_dim, vocab_size = 32, 32, 64

    key = jax.random.PRNGKey(0)
    ks = jax.random.split(key, 9)
    s = 1.0 / jnp.sqrt(hidden_dim)    # torch default LSTM/Linear init scale

    params = {
        "embed_w": jax.random.normal(ks[0], (vocab_size, embed_dim), jnp.float32),
        "w_ih": jax.random.uniform(ks[1], (4 * hidden_dim, embed_dim), jnp.float32, -s, s),
        "w_hh": jax.random.uniform(ks[2], (4 * hidden_dim, hidden_dim), jnp.float32, -s, s),
        "b_ih": jax.random.uniform(ks[3], (4 * hidden_dim,), jnp.float32, -s, s),
        "b_hh": jax.random.uniform(ks[4], (4 * hidden_dim,), jnp.float32, -s, s),
        "w_fc": jax.random.uniform(ks[5], (vocab_size, hidden_dim), jnp.float32, -s, s),
        "b_fc": jax.random.uniform(ks[6], (vocab_size,), jnp.float32, -s, s),
    }

    features = jax.random.normal(ks[7], (B, embed_dim), jnp.float32)
    captions = jax.random.randint(ks[8], (B, T), 0, vocab_size, jnp.int32)

    ref = jax.block_until_ready(_reference_forward(features, captions, params))

    # f32 validation path (exact to 1e-4).
    out = decoder_rnn_forward(features, captions, params,
                              time_block=4, batch_block=8, unroll=4)
    out = jax.block_until_ready(out)
    assert out.shape == (B, T, vocab_size), out.shape
    err = float(jnp.abs(out - ref).max())
    assert jnp.allclose(out, ref, atol=1e-4, rtol=1e-4), err

    # bf16-MXU fast path (v6e/v7x): same semantics, looser numeric tolerance.
    out_bf16 = decoder_rnn_forward(features, captions, params,
                                   time_block=4, batch_block=8, unroll=4,
                                   use_bf16=True)
    out_bf16 = jax.block_until_ready(out_bf16)
    err_bf16 = float(jnp.abs(out_bf16 - ref).max())
    assert err_bf16 < 1e-1, err_bf16

    print("KERNEL_OK")
</pallas_src>

<mosaic_0001>
module attributes {stable_mosaic.version = 11 : i64} {
  func.func @lstm_recurrence_kernel(%arg0: i32, %arg1: i32, %arg2: memref<4x8x32xf32, #tpu.memory_space<vmem>>, %arg3: memref<32x512xf32, #tpu.memory_space<vmem>>, %arg4: memref<128x512xf32, #tpu.memory_space<vmem>>, %arg5: memref<1x512xf32, #tpu.memory_space<vmem>>, %arg6: memref<4x8x128xf32, #tpu.memory_space<vmem>>, %arg7: memref<8x128xf32, #tpu.memory_space<vmem>>, %arg8: memref<8x128xf32, #tpu.memory_space<vmem>>, %arg9: memref<32x512xf32, #tpu.memory_space<vmem>>) attributes {dimension_semantics = [#tpu.dimension_semantics<parallel>, #tpu.dimension_semantics<arbitrary>], iteration_bounds = array<i64: 1, 3>, scalar_prefetch = 0 : i64, scratch_operands = 3 : i64, tpu.core_type = #tpu.core_type<tc>, window_params = [{transform_indices = @transform_0, window_bounds = array<i64: 4, 8, 32>}, {pipeline_mode = #tpu.pipeline_mode<synchronous>, transform_indices = @transform_1, window_bounds = array<i64: 32, 512>}, {pipeline_mode = #tpu.pipeline_mode<synchronous>, transform_indices = @transform_2, window_bounds = array<i64: 128, 512>}, {pipeline_mode = #tpu.pipeline_mode<synchronous>, transform_indices = @transform_3, window_bounds = array<i64: 1, 512>}, {transform_indices = @transform_4, window_bounds = array<i64: 4, 8, 128>}]} {
    %c0_i32 = arith.constant 0 : i32
    %0 = arith.cmpi eq, %arg1, %c0_i32 : i32
    %1 = arith.extui %0 : i1 to i32
    %c0_i32_0 = arith.constant 0 : i32
    %2 = arith.cmpi ne, %1, %c0_i32_0 : i32
    scf.if %2 {
      %cst_51 = arith.constant 0.000000e+00 : f32
      %156 = vector.broadcast %cst_51 : f32 to vector<8x128xf32>
      %c0_52 = arith.constant 0 : index
      %c0_53 = arith.constant 0 : index
      %157 = vector.load %arg7[%c0_52, %c0_53] : memref<8x128xf32, #tpu.memory_space<vmem>>, vector<8x128xf32>
      tpu.vector_store %arg7[%c0_52, %c0_53], %156 {strides = array<i32>} : memref<8x128xf32, #tpu.memory_space<vmem>>, vector<8x128xf32>,
      %cst_54 = arith.constant 0.000000e+00 : f32
      %158 = vector.broadcast %cst_54 : f32 to vector<8x128xf32>
      %c0_55 = arith.constant 0 : index
      %c0_56 = arith.constant 0 : index
      %159 = vector.load %arg8[%c0_55, %c0_56] : memref<8x128xf32, #tpu.memory_space<vmem>>, vector<8x128xf32>
      tpu.vector_store %arg8[%c0_55, %c0_56], %158 {strides = array<i32>} : memref<8x128xf32, #tpu.memory_space<vmem>>, vector<8x128xf32>,
    } else {
    }
    %c0 = arith.constant 0 : index
    %c0_1 = arith.constant 0 : index
    %c0_2 = arith.constant 0 : index
    %3 = vector.load %arg2[%c0, %c0_1, %c0_2] : memref<4x8x32xf32, #tpu.memory_space<vmem>>, vector<4x8x32xf32>
    %4 = vector.shape_cast %3 : vector<4x8x32xf32> to vector<32x32xf32>
    %c0_3 = arith.constant 0 : index
    %c0_4 = arith.constant 0 : index
    %5 = vector.load %arg3[%c0_3, %c0_4] : memref<32x512xf32, #tpu.memory_space<vmem>>, vector<32x512xf32>
    %cst = arith.constant dense<0.000000e+00> : vector<32x512xf32>
    %6 = tpu.matmul %4, %5, %cst {dimension_numbers = #tpu.dot_dimension_numbers<[1], [0], [0], [1], [0, 0, 1, 1], [], []>} : vector<32x32xf32>, vector<32x512xf32>, vector<32x512xf32> -> vector<32x512xf32>
    %c0_5 = arith.constant 0 : index
    %c0_6 = arith.constant 0 : index
    %7 = vector.load %arg5[%c0_5, %c0_6] : memref<1x512xf32, #tpu.memory_space<vmem>>, vector<1x512xf32>
    %8 = vector.broadcast %7 : vector<1x512xf32> to vector<32x512xf32>
    %9 = arith.addf %6, %8 : vector<32x512xf32>
    %c0_7 = arith.constant 0 : index
    %c0_8 = arith.constant 0 : index
    %10 = vector.load %arg9[%c0_7, %c0_8] : memref<32x512xf32, #tpu.memory_space<vmem>>, vector<32x512xf32>
    tpu.vector_store %arg9[%c0_7, %c0_8], %9 {strides = array<i32>} : memref<32x512xf32, #tpu.memory_space<vmem>>, vector<32x512xf32>,
    %c0_9 = arith.constant 0 : index
    %c0_10 = arith.constant 0 : index
    %11 = vector.load %arg4[%c0_9, %c0_10] : memref<128x512xf32, #tpu.memory_space<vmem>>, vector<128x512xf32>
    %c0_11 = arith.constant 0 : index
    %c0_12 = arith.constant 0 : index
    %12 = vector.load %arg7[%c0_11, %c0_12] : memref<8x128xf32, #tpu.memory_space<vmem>>, vector<8x128xf32>
    %c0_13 = arith.constant 0 : index
    %c0_14 = arith.constant 0 : index
    %13 = vector.load %arg8[%c0_13, %c0_14] : memref<8x128xf32, #tpu.memory_space<vmem>>, vector<8x128xf32>
    %c0_i32_15 = arith.constant 0 : i32
    %c8_i32 = arith.constant 8 : i32
    %14 = arith.muli %c0_i32_15, %c8_i32 : i32
    %15 = tpu.assume_multiple %14, 8 : i32
    %16 = arith.index_cast %15 : i32 to index
    %c0_16 = arith.constant 0 : index
    %17 = vector.load %arg9[%16, %c0_16] : memref<32x512xf32, #tpu.memory_space<vmem>>, vector<8x512xf32>
    %cst_17 = arith.constant dense<0.000000e+00> : vector<8x512xf32>
    %18 = tpu.matmul %12, %11, %cst_17 {dimension_numbers = #tpu.dot_dimension_numbers<[1], [0], [0], [1], [0, 0, 1, 1], [], []>} : vector<8x128xf32>, vector<128x512xf32>, vector<8x512xf32> -> vector<8x512xf32>
    %19 = arith.addf %17, %18 : vector<8x512xf32>
    %20 = vector.extract_strided_slice %19 {offsets = [0, 0], sizes = [8, 128], strides = [1, 1]} : vector<8x512xf32> to vector<8x128xf32>
    %21 = arith.negf %20 : vector<8x128xf32>
    %22 = math.exp %21 : vector<8x128xf32>
    %cst_18 = arith.constant 1.000000e+00 : f32
    %23 = vector.broadcast %cst_18 : f32 to vector<8x128xf32>
    %24 = arith.addf %23, %22 : vector<8x128xf32>
    %25 = arith.divf %23, %24 : vector<8x128xf32>
    %26 = vector.extract_strided_slice %19 {offsets = [0, 128], sizes = [8, 128], strides = [1, 1]} : vector<8x512xf32> to vector<8x128xf32>
    %27 = arith.negf %26 : vector<8x128xf32>
    %28 = math.exp %27 : vector<8x128xf32>
    %cst_19 = arith.constant 1.000000e+00 : f32
    %29 = vector.broadcast %cst_19 : f32 to vector<8x128xf32>
    %30 = arith.addf %29, %28 : vector<8x128xf32>
    %31 = arith.divf %29, %30 : vector<8x128xf32>
    %32 = vector.extract_strided_slice %19 {offsets = [0, 256], sizes = [8, 128], strides = [1, 1]} : vector<8x512xf32> to vector<8x128xf32>
    %33 = math.tanh %32 : vector<8x128xf32>
    %34 = vector.extract_strided_slice %19 {offsets = [0, 384], sizes = [8, 128], strides = [1, 1]} : vector<8x512xf32> to vector<8x128xf32>
    %35 = arith.negf %34 : vector<8x128xf32>
    %36 = math.exp %35 : vector<8x128xf32>
    %cst_20 = arith.constant 1.000000e+00 : f32
    %37 = vector.broadcast %cst_20 : f32 to vector<8x128xf32>
    %38 = arith.addf %37, %36 : vector<8x128xf32>
    %39 = arith.divf %37, %38 : vector<8x128xf32>
    %40 = arith.mulf %31, %13 : vector<8x128xf32>
    %41 = arith.mulf %25, %33 : vector<8x128xf32>
    %42 = arith.addf %40, %41 : vector<8x128xf32>
    %43 = math.tanh %42 : vector<8x128xf32>
    %44 = arith.mulf %39, %43 : vector<8x128xf32>
    %45 = arith.index_cast %c0_i32_15 : i32 to index
    %c0_21 = arith.constant 0 : index
    %c0_22 = arith.constant 0 : index
    %46 = vector.load %arg6[%45, %c0_21, %c0_22] : memref<4x8x128xf32, #tpu.memory_space<vmem>>, vector<1x8x128xf32>
    %47 = vector.shape_cast %46 : vector<1x8x128xf32> to vector<8x128xf32>
    %48 = vector.shape_cast %44 : vector<8x128xf32> to vector<1x8x128xf32>
    tpu.vector_store %arg6[%45, %c0_21, %c0_22], %48 {strides = array<i32>} : memref<4x8x128xf32, #tpu.memory_space<vmem>>, vector<1x8x128xf32>,
    %c1_i32 = arith.constant 1 : i32
    %c8_i32_23 = arith.constant 8 : i32
    %49 = arith.muli %c1_i32, %c8_i32_23 : i32
    %50 = tpu.assume_multiple %49, 8 : i32
    %51 = arith.index_cast %50 : i32 to index
    %c0_24 = arith.constant 0 : index
    %52 = vector.load %arg9[%51, %c0_24] : memref<32x512xf32, #tpu.memory_space<vmem>>, vector<8x512xf32>
    %cst_25 = arith.constant dense<0.000000e+00> : vector<8x512xf32>
    %53 = tpu.matmul %44, %11, %cst_25 {dimension_numbers = #tpu.dot_dimension_numbers<[1], [0], [0], [1], [0, 0, 1, 1], [], []>} : vector<8x128xf32>, vector<128x512xf32>, vector<8x512xf32> -> vector<8x512xf32>
    %54 = arith.addf %52, %53 : vector<8x512xf32>
    %55 = vector.extract_strided_slice %54 {offsets = [0, 0], sizes = [8, 128], strides = [1, 1]} : vector<8x512xf32> to vector<8x128xf32>
    %56 = arith.negf %55 : vector<8x128xf32>
    %57 = math.exp %56 : vector<8x128xf32>
    %cst_26 = arith.constant 1.000000e+00 : f32
    %58 = vector.broadcast %cst_26 : f32 to vector<8x128xf32>
    %59 = arith.addf %58, %57 : vector<8x128xf32>
    %60 = arith.divf %58, %59 : vector<8x128xf32>
    %61 = vector.extract_strided_slice %54 {offsets = [0, 128], sizes = [8, 128], strides = [1, 1]} : vector<8x512xf32> to vector<8x128xf32>
    %62 = arith.negf %61 : vector<8x128xf32>
    %63 = math.exp %62 : vector<8x128xf32>
    %cst_27 = arith.constant 1.000000e+00 : f32
    %64 = vector.broadcast %cst_27 : f32 to vector<8x128xf32>
    %65 = arith.addf %64, %63 : vector<8x128xf32>
    %66 = arith.divf %64, %65 : vector<8x128xf32>
    %67 = vector.extract_strided_slice %54 {offsets = [0, 256], sizes = [8, 128], strides = [1, 1]} : vector<8x512xf32> to vector<8x128xf32>
    %68 = math.tanh %67 : vector<8x128xf32>
    %69 = vector.extract_strided_slice %54 {offsets = [0, 384], sizes = [8, 128], strides = [1, 1]} : vector<8x512xf32> to vector<8x128xf32>
    %70 = arith.negf %69 : vector<8x128xf32>
    %71 = math.exp %70 : vector<8x128xf32>
    %cst_28 = arith.constant 1.000000e+00 : f32
    %72 = vector.broadcast %cst_28 : f32 to vector<8x128xf32>
    %73 = arith.addf %72, %71 : vector<8x128xf32>
    %74 = arith.divf %72, %73 : vector<8x128xf32>
    %75 = arith.mulf %66, %42 : vector<8x128xf32>
    %76 = arith.mulf %60, %68 : vector<8x128xf32>
    %77 = arith.addf %75, %76 : vector<8x128xf32>
    %78 = math.tanh %77 : vector<8x128xf32>
    %79 = arith.mulf %74, %78 : vector<8x128xf32>
    %80 = arith.index_cast %c1_i32 : i32 to index
    %c0_29 = arith.constant 0 : index
    %c0_30 = arith.constant 0 : index
    %81 = vector.load %arg6[%80, %c0_29, %c0_30] : memref<4x8x128xf32, #tpu.memory_space<vmem>>, vector<1x8x128xf32>
    %82 = vector.shape_cast %81 : vector<1x8x128xf32> to vector<8x128xf32>
    %83 = vector.shape_cast %79 : vector<8x128xf32> to vector<1x8x128xf32>
    tpu.vector_store %arg6[%80, %c0_29, %c0_30], %83 {strides = array<i32>} : memref<4x8x128xf32, #tpu.memory_space<vmem>>, vector<1x8x128xf32>,
    %c2_i32 = arith.constant 2 : i32
    %c8_i32_31 = arith.constant 8 : i32
    %84 = arith.muli %c2_i32, %c8_i32_31 : i32
    %85 = tpu.assume_multiple %84, 8 : i32
    %86 = arith.index_cast %85 : i32 to index
    %c0_32 = arith.constant 0 : index
    %87 = vector.load %arg9[%86, %c0_32] : memref<32x512xf32, #tpu.memory_space<vmem>>, vector<8x512xf32>
    %cst_33 = arith.constant dense<0.000000e+00> : vector<8x512xf32>
    %88 = tpu.matmul %79, %11, %cst_33 {dimension_numbers = #tpu.dot_dimension_numbers<[1], [0], [0], [1], [0, 0, 1, 1], [], []>} : vector<8x128xf32>, vector<128x512xf32>, vector<8x512xf32> -> vector<8x512xf32>
    %89 = arith.addf %87, %88 : vector<8x512xf32>
    %90 = vector.extract_strided_slice %89 {offsets = [0, 0], sizes = [8, 128], strides = [1, 1]} : vector<8x512xf32> to vector<8x128xf32>
    %91 = arith.negf %90 : vector<8x128xf32>
    %92 = math.exp %91 : vector<8x128xf32>
    %cst_34 = arith.constant 1.000000e+00 : f32
    %93 = vector.broadcast %cst_34 : f32 to vector<8x128xf32>
    %94 = arith.addf %93, %92 : vector<8x128xf32>
    %95 = arith.divf %93, %94 : vector<8x128xf32>
    %96 = vector.extract_strided_slice %89 {offsets = [0, 128], sizes = [8, 128], strides = [1, 1]} : vector<8x512xf32> to vector<8x128xf32>
    %97 = arith.negf %96 : vector<8x128xf32>
    %98 = math.exp %97 : vector<8x128xf32>
    %cst_35 = arith.constant 1.000000e+00 : f32
    %99 = vector.broadcast %cst_35 : f32 to vector<8x128xf32>
    %100 = arith.addf %99, %98 : vector<8x128xf32>
    %101 = arith.divf %99, %100 : vector<8x128xf32>
    %102 = vector.extract_strided_slice %89 {offsets = [0, 256], sizes = [8, 128], strides = [1, 1]} : vector<8x512xf32> to vector<8x128xf32>
    %103 = math.tanh %102 : vector<8x128xf32>
    %104 = vector.extract_strided_slice %89 {offsets = [0, 384], sizes = [8, 128], strides = [1, 1]} : vector<8x512xf32> to vector<8x128xf32>
    %105 = arith.negf %104 : vector<8x128xf32>
    %106 = math.exp %105 : vector<8x128xf32>
    %cst_36 = arith.constant 1.000000e+00 : f32
    %107 = vector.broadcast %cst_36 : f32 to vector<8x128xf32>
    %108 = arith.addf %107, %106 : vector<8x128xf32>
    %109 = arith.divf %107, %108 : vector<8x128xf32>
    %110 = arith.mulf %101, %77 : vector<8x128xf32>
    %111 = arith.mulf %95, %103 : vector<8x128xf32>
    %112 = arith.addf %110, %111 : vector<8x128xf32>
    %113 = math.tanh %112 : vector<8x128xf32>
    %114 = arith.mulf %109, %113 : vector<8x128xf32>
    %115 = arith.index_cast %c2_i32 : i32 to index
    %c0_37 = arith.constant 0 : index
    %c0_38 = arith.constant 0 : index
    %116 = vector.load %arg6[%115, %c0_37, %c0_38] : memref<4x8x128xf32, #tpu.memory_space<vmem>>, vector<1x8x128xf32>
    %117 = vector.shape_cast %116 : vector<1x8x128xf32> to vector<8x128xf32>
    %118 = vector.shape_cast %114 : vector<8x128xf32> to vector<1x8x128xf32>
    tpu.vector_store %arg6[%115, %c0_37, %c0_38], %118 {strides = array<i32>} : memref<4x8x128xf32, #tpu.memory_space<vmem>>, vector<1x8x128xf32>,
    %c3_i32 = arith.constant 3 : i32
    %c8_i32_39 = arith.constant 8 : i32
    %119 = arith.muli %c3_i32, %c8_i32_39 : i32
    %120 = tpu.assume_multiple %119, 8 : i32
    %121 = arith.index_cast %120 : i32 to index
    %c0_40 = arith.constant 0 : index
    %122 = vector.load %arg9[%121, %c0_40] : memref<32x512xf32, #tpu.memory_space<vmem>>, vector<8x512xf32>
    %cst_41 = arith.constant dense<0.000000e+00> : vector<8x512xf32>
    %123 = tpu.matmul %114, %11, %cst_41 {dimension_numbers = #tpu.dot_dimension_numbers<[1], [0], [0], [1], [0, 0, 1, 1], [], []>} : vector<8x128xf32>, vector<128x512xf32>, vector<8x512xf32> -> vector<8x512xf32>
    %124 = arith.addf %122, %123 : vector<8x512xf32>
    %125 = vector.extract_strided_slice %124 {offsets = [0, 0], sizes = [8, 128], strides = [1, 1]} : vector<8x512xf32> to vector<8x128xf32>
    %126 = arith.negf %125 : vector<8x128xf32>
    %127 = math.exp %126 : vector<8x128xf32>
    %cst_42 = arith.constant 1.000000e+00 : f32
    %128 = vector.broadcast %cst_42 : f32 to vector<8x128xf32>
    %129 = arith.addf %128, %127 : vector<8x128xf32>
    %130 = arith.divf %128, %129 : vector<8x128xf32>
    %131 = vector.extract_strided_slice %124 {offsets = [0, 128], sizes = [8, 128], strides = [1, 1]} : vector<8x512xf32> to vector<8x128xf32>
    %132 = arith.negf %131 : vector<8x128xf32>
    %133 = math.exp %132 : vector<8x128xf32>
    %cst_43 = arith.constant 1.000000e+00 : f32
    %134 = vector.broadcast %cst_43 : f32 to vector<8x128xf32>
    %135 = arith.addf %134, %133 : vector<8x128xf32>
    %136 = arith.divf %134, %135 : vector<8x128xf32>
    %137 = vector.extract_strided_slice %124 {offsets = [0, 256], sizes = [8, 128], strides = [1, 1]} : vector<8x512xf32> to vector<8x128xf32>
    %138 = math.tanh %137 : vector<8x128xf32>
    %139 = vector.extract_strided_slice %124 {offsets = [0, 384], sizes = [8, 128], strides = [1, 1]} : vector<8x512xf32> to vector<8x128xf32>
    %140 = arith.negf %139 : vector<8x128xf32>
    %141 = math.exp %140 : vector<8x128xf32>
    %cst_44 = arith.constant 1.000000e+00 : f32
    %142 = vector.broadcast %cst_44 : f32 to vector<8x128xf32>
    %143 = arith.addf %142, %141 : vector<8x128xf32>
    %144 = arith.divf %142, %143 : vector<8x128xf32>
    %145 = arith.mulf %136, %112 : vector<8x128xf32>
    %146 = arith.mulf %130, %138 : vector<8x128xf32>
    %147 = arith.addf %145, %146 : vector<8x128xf32>
    %148 = math.tanh %147 : vector<8x128xf32>
    %149 = arith.mulf %144, %148 : vector<8x128xf32>
    %150 = arith.index_cast %c3_i32 : i32 to index
    %c0_45 = arith.constant 0 : index
    %c0_46 = arith.constant 0 : index
    %151 = vector.load %arg6[%150, %c0_45, %c0_46] : memref<4x8x128xf32, #tpu.memory_space<vmem>>, vector<1x8x128xf32>
    %152 = vector.shape_cast %151 : vector<1x8x128xf32> to vector<8x128xf32>
    %153 = vector.shape_cast %149 : vector<8x128xf32> to vector<1x8x128xf32>
    tpu.vector_store %arg6[%150, %c0_45, %c0_46], %153 {strides = array<i32>} : memref<4x8x128xf32, #tpu.memory_space<vmem>>, vector<1x8x128xf32>,
    %c4_i32 = arith.constant 4 : i32
    %c0_47 = arith.constant 0 : index
    %c0_48 = arith.constant 0 : index
    %154 = vector.load %arg7[%c0_47, %c0_48] : memref<8x128xf32, #tpu.memory_space<vmem>>, vector<8x128xf32>
    tpu.vector_store %arg7[%c0_47, %c0_48], %149 {strides = array<i32>} : memref<8x128xf32, #tpu.memory_space<vmem>>, vector<8x128xf32>,
    %c0_49 = arith.constant 0 : index
    %c0_50 = arith.constant 0 : index
    %155 = vector.load %arg8[%c0_49, %c0_50] : memref<8x128xf32, #tpu.memory_space<vmem>>, vector<8x128xf32>
    tpu.vector_store %arg8[%c0_49, %c0_50], %147 {strides = array<i32>} : memref<8x128xf32, #tpu.memory_space<vmem>>, vector<8x128xf32>,
    return
  }
  func.func @transform_0(%arg0: i32, %arg1: i32) -> (i32, i32, i32) {
    %c0_i32 = arith.constant 0 : i32
    %c0_i32_0 = arith.constant 0 : i32
    return %arg1, %arg0, %c0_i32 : i32, i32, i32
  }
  func.func @transform_1(%arg0: i32, %arg1: i32) -> (i32, i32) {
    %c0_i32 = arith.constant 0 : i32
    %c0_i32_0 = arith.constant 0 : i32
    %c0_i32_1 = arith.constant 0 : i32
    return %c0_i32, %c0_i32_0 : i32, i32
  }
  func.func @transform_2(%arg0: i32, %arg1: i32) -> (i32, i32) {
    %c0_i32 = arith.constant 0 : i32
    %c0_i32_0 = arith.constant 0 : i32
    %c0_i32_1 = arith.constant 0 : i32
    return %c0_i32, %c0_i32_0 : i32, i32
  }
  func.func @transform_3(%arg0: i32, %arg1: i32) -> (i32, i32) {
    %c0_i32 = arith.constant 0 : i32
    %c0_i32_0 = arith.constant 0 : i32
    %c0_i32_1 = arith.constant 0 : i32
    return %c0_i32, %c0_i32_0 : i32, i32
  }
  func.func @transform_4(%arg0: i32, %arg1: i32) -> (i32, i32, i32) {
    %c0_i32 = arith.constant 0 : i32
    %c0_i32_0 = arith.constant 0 : i32
    return %arg1, %arg0, %c0_i32 : i32, i32, i32
  }
}

</mosaic_0001>

<bundles_post_ra>
// kernel: tpu_custom_call.1
= control target key start
LH: loop header
LB: loop body
LE: loop exit
PB: predicated region body
PF: predicated region fallthrough
CT: control target
= control target key end

     0   :  { %9 = vsyncpa [#allocation6], 0  ;;  %s2482_s0 = inlined_call_operand.hbm [shape: f32[12,8,32], index: 0, kind: input, shape index: {}]   ;;  %s2483_s1 = inlined_call_operand.hbm [shape: f32[32,512], index: 1, kind: input, shape index: {}]   ;;  %s2484_s2 = inlined_call_operand.hbm [shape: f32[128,512], index: 2, kind: input, shape index: {}]   ;;  %s2485_s3 = inlined_call_operand.vmem [shape: f32[1,512], index: 3, kind: input, shape index: {}]   ;;  %s2486_s4 = inlined_call_operand.hbm [shape: f32[12,8,128], index: 4, kind: output, shape index: {}]  }
   0x1   :  { %11 = vsyncpa [#allocation6 + $0x1], 0 }
   0x2   :  { %12 = vsyncpa [#allocation9], 0 }
   0x3   :  { %13 = vsyncpa [#allocation7], 0 }
   0x4   :  { %15 = vsyncpa [#allocation7 + $0x1], 0  ;;  %s1827_s15 = smov 0   ;;  %s1829_s16 = smov 0  }
   0x5   :  { %s1831_s17 = smov 0   ;;  %s1833_s18 = smov 0  }
   0x6   :  { %s1835_s19 = smov 0   ;;  %s1837_s20 = smov 0  }
   0x7 LB: > { %s1424_s21 = sadd.s32 4294967295, %s1788_s20   ;;  %s1425_s22 = sadd.s32 4294967294, %s1788_s20   ;;  %s1788_s20 = sphi %s1837_s20, %s21_s20   ;;  %s1784_s19 = sphi %s1835_s19, %s2658_s19   ;;  %s1780_s18 = sphi %s1833_s18, %s2657_s18   ;;  %s1776_s17 = sphi %s1831_s17, %s2656_s17   ;;  %s1772_s16 = sphi %s1829_s16, %s2655_s16   ;;  %s1768_s15 = sphi %s1827_s15, %s2654_s15  }
   0x8   : > { %p55_p0 = scmp.ne.s32.totalorder %s1772_s16, %s1768_s15  ;;  %p1861_p1 = scmp.eq.s32.totalorder %s1424_s21, 0 }
   0x9   : > { %p1865_p2 = scmp.eq.s32.totalorder %s1424_s21, 2  ;;  %p150_p3 = scmp.eq.s32.totalorder %s1425_s22, 2 }
   0xa   : > { %s2544_s23 = scalar_select %p1861_p1, 1, 0 }
   0xb   : > { %p1871_p4 = por %p1861_p1, %p55_p0  ;;  %p1426_p5 = scmp.ge.s32.totalorder %s1788_s20, 1 }
   0xc   : > { %p1876_p6 = por %p150_p3, %p55_p0  ;;  %p157_p7 = scmp.lt.s32.totalorder %s1788_s20, 4 }
   0xd   : > { %s2546_s25 = scalar_select %p1871_p4, 1, 0 }
   0xe   : > { %s2547_s26 = scalar_select %p1876_p6, 1, 0 }
   0xf   : > { %p1881_p8 = pnand %p1426_p5, %p157_p7  ;;  %s1790_s28 = smov [#allocation8]  }
  0x10   : > { %s169_s29 = sshll.u32 %s1790_s28, 4  ;;  %s1791_s5 = smov [#allocation10]   ;;  %s170_s29 = int_to_ptr.vmem [resolvable:$true] %s169_s29 }
  0x11   : > { %p1481_p9 = pneg %p1881_p8  ;;  %s182_s6 = sshll.u32 %s1791_s5, 4  ;;  %s183_s6 = int_to_ptr.vmem [resolvable:$true] %s182_s6 }
  0x12   : > { %s1635_s7 = scalar_lea.vmem %s170_s29, 2048  ;;  %p1643_p3 = scmp.lt.s32.totalorder %s170_s29, %s170_s29 }
  0x13   : > { %p1889_p10 = pnand %p1481_p9, %p1861_p1  ;;  %p1636_p12 = scmp.ne.s32.totalorder %s170_s29, %s1635_s7 }
  0x14   : > { %p1644_p5 = scmp.lt.s32.totalorder %s1635_s7, %s1635_s7 }
  0x15   : > { %p1626_p11 = pneg %p1889_p10 }
  0x16   : > { %p1645_p7 = por %p1644_p5, %p1643_p3 }
  0x17   : > { %p1638_p13 = pnand %p1636_p12, %p1626_p11 }
  0x19   : > { %p1639_p0 = pneg %p1638_p13 }
  0x1b   : > { %p1646_p9 = pnand %p1645_p7, %p1639_p0 }
  0x1d   : > { %1649 = shalt.err (!%p1646_p9)
}
  0x1e   : > { %s1792_s8 = smov 512   ;;  %s1793_s9 = smov 32  }
  0x1f   : > { %1484 = dma.hbm_to_vmem [thread:$0]  (!%p1889_p10), %s2483_s1, 2048, %s170_s29, [#allocation9], %s1792_s8, %s1792_s8, %s1793_s9  }
  0x20   : > { %s1661_s12 = scalar_lea.vmem %s183_s6, 8192  ;;  %p1669_p1 = scmp.lt.s32.totalorder %s183_s6, %s183_s6 }
  0x21   : > { %p1662_p6 = scmp.ne.s32.totalorder %s183_s6, %s1661_s12  ;;  %p1670_p4 = scmp.lt.s32.totalorder %s1661_s12, %s1661_s12 }
  0x23   : > { %p1664_p12 = pnand %p1662_p6, %p1626_p11  ;;  %p1671_p3 = por %p1670_p4, %p1669_p1 }
  0x25   : > { %p1665_p13 = pneg %p1664_p12 }
  0x27   : > { %p1672_p0 = pnand %p1671_p3, %p1665_p13 }
  0x29   : > { %1675 = shalt.err (!%p1672_p0)
}
  0x2a   : > { %1487 = dma.hbm_to_vmem [thread:$0]  (!%p1889_p10), %s2484_s2, 8192, %s183_s6, [#allocation9], %s1792_s8, %s1792_s8, %s1793_s9  }
  0x2b   : > { %s30_s21 = sadd.s32 1, %s1784_s19  ;;  %s42_s22 = sadd.s32 1, %s1776_s17 }
  0x2c   : > { %p31_p1 = scmp.ge.s32.totalorder %s30_s21, 3  ;;  %p49_p4 = scmp.ne.s32.totalorder %s1776_s17, %s1772_s16 }
  0x2d   : > { %p50_p6 = scmp.eq.s32.totalorder %s1788_s20, 0  ;;  %p1498_p11 = scmp.lt.s32.totalorder %s1788_s20, 3 }
  0x2e   : > { %s2660_s21 = smov (%p31_p1, %s30_s21), 0  ;;  %p1921_p7 = por %p1865_p2, %p49_p4 }
  0x2f   : > { %p51_p5 = por %p50_p6, %p49_p4  ;;  %s37_s29 = ssub.s32 %s1784_s19, %s2660_s21 }
  0x30   : > { %s199_s30 = sand.u32 1, %s1776_s17   ;;  %p40_p9 = scmp.eq.s32.totalorder %s37_s29, 0 }
  0x31   : > { %s1430_s5 = sshll.u32 %s199_s30, 5  ;;  %s1467_s6 = sshll.u32 %s1784_s19, 9 }
  0x32   : > { %s1930_s7 = scalar_select %p40_p9, %s1776_s17, %s42_s22  }
  0x33   : > { %s210_s10 = scalar_lea.hbm %s2482_s0, %s1467_s6  ;;  %s203_s11 = scalar_lea.vmem [#allocation5], %s1430_s5 }
  0x34   : > { %s211_s12 = sshll.u32 %s203_s11, 4  ;;  %p1937_p10 = pnand %p1498_p11, %p51_p5  ;;  %s212_s12 = int_to_ptr.vmem [resolvable:$true] %s211_s12 }
  0x35   : > { %s200_s13 = scalar_lea.sflag [#allocation6], %s199_s30  ;;  %s1689_s14 = scalar_lea.vmem %s212_s12, 512 }
  0x36   : > { %p1678_p2 = pneg %p1937_p10  ;;  %p1690_p12 = scmp.ne.s32.totalorder %s212_s12, %s1689_s14 }
  0x37   : > { %s1794_s22 = smov [#allocation5]  }
  0x38   : > { %p1692_p13 = pnand %p1690_p12, %p1678_p2  ;;  %s1694_s29 = sshll.u32 %s1794_s22, 4  ;;  %s1695_s29 = int_to_ptr.vmem [resolvable:$false] %s1694_s29 }
  0x39   : > { %s1696_s6 = scalar_lea.vmem %s1695_s29, 1024  ;;  %p1697_p0 = scmp.lt.s32.totalorder %s212_s12, %s1695_s29 }
  0x3a   : > { %p1693_p3 = pneg %p1692_p13  ;;  %p1698_p1 = scmp.lt.s32.totalorder %s1696_s6, %s1689_s14 }
  0x3c   : > { %p1699_p4 = por %p1698_p1, %p1697_p0 }
  0x3e   : > { %p1700_p6 = pnand %p1699_p4, %p1693_p3 }
  0x40   : > { %1703 = shalt.err (!%p1700_p6)
}
  0x41   : > { %s1795_s5 = smov 128   ;;  %s1796_s8 = smov 8  }
  0x42   : > { %1491 = dma.hbm_to_vmem [thread:$0]  (!%p1937_p10), %s210_s10, 512, %s212_s12, %s200_s13, %s1795_s5, %s1795_s5, %s1796_s8  }
  0x43   : > { %223 = sbr.rel (%p1881_p8) target bundleno = 1148 (0x47c), region = 36 }
  0x48   : > { %s1948_s30 = sand.u32 1, %s1772_s16   ;;  %p2552_p11 = scmp.ne.s32.totalorder %s2546_s25, 0 }
  0x49   : > { %s1434_s9 = sshll.u32 %s1948_s30, 5  ;;  %s226_s11 = scalar_lea.sflag [#allocation6], %s1948_s30 }
  0x4a   : > { %s1952_s14 = scalar_lea.vmem [#allocation5], %s1434_s9 }
  0x4b   : > { %1755 = dma.done.wait (%p2552_p11), %s226_s11, 512  }
  0x4c   : > { %1757 = vsyncadd (%p2552_p11), %s226_s11, 4294966784  ;;  %p2553_p5 = scmp.ne.s32.totalorder %s2544_s23, 0 }
  0x4e   : > { %1759 = dma.done.wait (%p2553_p5), [#allocation9], 10240  }
  0x4f   : > { %1761 = vsyncadd (%p2553_p5), [#allocation9], 4294957056  ;;  %s1962_s27 = scalar_lea.vmem [#allocation11], %s1434_s9  ;;  %p1438_p8 = scmp.ne.s32.totalorder %s1780_s18, 0 }
  0x51   : > { %267 = sbr.rel (%p1438_p8) target bundleno = 88 (0x58), region = 52 }
  0x56   : > { %v1797_v0 = vmov 0.0  }
  0x57   : > { %268 = vst [vmem:[#allocation2] sm:$0xff] %v1797_v0  ;;  %269 = vst [vmem:[#allocation3] sm:$0xff] %v1797_v0 }
  0x58 PF: > { %v287_v1 = vld [vmem:[#allocation8 + $0x68] sm:$0xff]  ;;  %v289_v2 = vld [vmem:[#allocation8 + $0x78] sm:$0xff]  ;;  %v286_v3 = vld [vmem:[#allocation8 + $0x60] sm:$0xff]  ;;  %vm312_vm0 = vcmask 261120   ;;  %v2492_v19 = vmov 0.0   ;;  %s1468_s10 = sshll.u32 %s1780_s18, 9 }
  0x59   : > { %349 = vmatprep.subr.mxu0 %v287_v1  ;;  %438 = vmatprep.subr.mxu1 %v289_v2  ;;  %v288_v4 = vld [vmem:[#allocation8 + $0x70] sm:$0xff]  ;;  %v283_v5 = vld [vmem:[#allocation8 + $0x48] sm:$0xff]  ;;  %v285_v6 = vld [vmem:[#allocation8 + $0x58] sm:$0xff]  ;;  %s1317_s12 = sshll.u32 %s1962_s27, 4  ;;  %s2432_s22 = scalar_lea.hbm %s2486_s4, %s1468_s10  ;;  %s2434_s12 = int_to_ptr.vmem [resolvable:$true] %s1317_s12 }
  0x5a   : > { %350 = vmatpush1.msra.mxu0 %v286_v3  ;;  %439 = vmatpush1.msra.mxu1 %v288_v4  ;;  %v282_v7 = vld [vmem:[#allocation8 + $0x40] sm:$0xff]  ;;  %v284_v8 = vld [vmem:[#allocation8 + $0x50] sm:$0xff]  ;;  %v279_v9 = vld [vmem:[#allocation8 + $0x28] sm:$0xff]  ;;  %s1303_s29 = scalar_lea.sflag [#allocation7], %s1948_s30  ;;  %s1704_s6 = scalar_lea.vmem %s2434_s12, 512 }
  0x5b   : > { %351 = vmatprep.subr.mxu0 %v283_v5  ;;  %440 = vmatprep.subr.mxu1 %v285_v6  ;;  %v281_v10 = vld [vmem:[#allocation8 + $0x38] sm:$0xff]  ;;  %v278_v11 = vld [vmem:[#allocation8 + $0x20] sm:$0xff]  ;;  %v280_v12 = vld [vmem:[#allocation8 + $0x30] sm:$0xff]  ;;  %p1705_p9 = scmp.ne.s32.totalorder %s2434_s12, %s1704_s6  ;;  %s1799_s18 = smov [#allocation11]  }
  0x5c   : > { %352 = vmatpush1.msra.mxu0 %v282_v7  ;;  %441 = vmatpush1.msra.mxu1 %v284_v8  ;;  %v275_v13 = vld [vmem:[#allocation8 + $0x8] sm:$0xff]  ;;  %v277_v14 = vld [vmem:[#allocation8 + $0x18] sm:$0xff]  ;;  %v274_v15 = vld [vmem:[#allocation8] sm:$0xff]  ;;  %s1708_s5 = sshll.u32 %s1799_s18, 4  ;;  %s1709_s5 = int_to_ptr.vmem [resolvable:$false] %s1708_s5 }
  0x5d   : > { %353 = vmatprep.subr.mxu0 %v279_v9  ;;  %442 = vmatprep.subr.mxu1 %v281_v10  ;;  %v276_v16 = vld [vmem:[#allocation8 + $0x10] sm:$0xff]  ;;  %v270_v17 = vld [vmem:[%s1952_s14] sm:$0xff]  ;;  %v1966_v18 = vld [vmem:[#allocation10 + $0x1e8] sm:$0xff]  ;;  %p1706_p10 = pnand %p1705_p9, %p1921_p7  ;;  %s1710_s8 = scalar_lea.vmem %s1709_s5, 1024 }
  0x5e   : > { %354 = vmatpush1.msra.mxu0 %v278_v11  ;;  %443 = vmatpush1.msra.mxu1 %v280_v12  ;;  %2554 = vst [vmem:[#allocation15_spill] sm:$0xff] %v1966_v18  ;;  %v1969_v20 = vld [vmem:[#allocation10 + $0x1f8] sm:$0xff]  ;;  %v1972_v21 = vld [vmem:[#allocation10 + $0x1e0] sm:$0xff]  ;;  %v1974_v22 = vld [vmem:[#allocation10 + $0x1f0] sm:$0xff]  ;;  %p1711_p12 = scmp.lt.s32.totalorder %s2434_s12, %s1709_s5  ;;  %p1712_p13 = scmp.lt.s32.totalorder %s1710_s8, %s1704_s6 }
  0x5f   : > { %355 = vmatprep.subr.mxu0 %v275_v13  ;;  %444 = vmatprep.subr.mxu1 %v277_v14  ;;  %2555 = vst [vmem:[#allocation16_spill] sm:$0xff] %v1969_v20  ;;  %v1978_v23 = vld [vmem:[#allocation10 + $0x1c8] sm:$0xff]  ;;  %v1980_v24 = vld [vmem:[#allocation10 + $0x1d8] sm:$0xff]  ;;  %v1984_v25 = vld [vmem:[#allocation10 + $0x1c0] sm:$0xff]  ;;  %p1707_p2 = pneg %p1706_p10 }
  0x60   : > { %356 = vmatpush1.msra.mxu0 %v274_v15  ;;  %389 = vmatprep.mubr.f32.mxu0 %v2492_v19  ;;  %v1986_v26 = vld [vmem:[#allocation10 + $0x1d0] sm:$0xff]  ;;  %v1990_v27 = vld [vmem:[#allocation10 + $0x1a8] sm:$0xff]  ;;  %v1992_v28 = vld [vmem:[#allocation10 + $0x1b8] sm:$0xff]  ;;  %p1713_p3 = por %p1712_p13, %p1711_p12 }
  0x61   : > { %445 = vmatpush1.msra.mxu1 %v276_v16  ;;  %1439 = vmatmul.mubr.msk.f32.vlgmr.msra.gmra.mxu0 %vm312_vm0, %v270_v17  ;;  %v1996_v29 = vld [vmem:[#allocation10 + $0x1a0] sm:$0xff]  ;;  %v1998_v30 = vld [vmem:[#allocation10 + $0x1b0] sm:$0xff]  ;;  %v2002_v31 = vld [vmem:[#allocation10 + $0x188] sm:$0xff] }
  0x62   : > { %478 = vmatprep.mubr.f32.mxu1 %v2492_v19  ;;  %592 = vmatprep.subr.mxu0 %v1966_v18  ;;  %v2004_v32 = vld [vmem:[#allocation10 + $0x198] sm:$0xff]  ;;  %v2008_v33 = vld [vmem:[#allocation10 + $0x180] sm:$0xff]  ;;  %v2010_v34 = vld [vmem:[#allocation10 + $0x190] sm:$0xff]  ;;  %p1714_p0 = pnand %p1713_p3, %p1707_p2 }
  0x63   : > { %663 = vmatprep.subr.mxu1 %v1969_v20  ;;  %1443 = vmatmul.mubr.msk.f32.vlgmr.msra.gmra.mxu1 %vm312_vm0, %v270_v17  ;;  %v2014_v35 = vld [vmem:[#allocation10 + $0x168] sm:$0xff]  ;;  %v2016_v36 = vld [vmem:[#allocation10 + $0x178] sm:$0xff]  ;;  %v2020_v37 = vld [vmem:[#allocation10 + $0x160] sm:$0xff] }
  0x64   : > { %593 = vmatpush1.msra.mxu0 %v1972_v21  ;;  %664 = vmatpush1.msra.mxu1 %v1974_v22  ;;  %v2022_v38 = vld [vmem:[#allocation10 + $0x170] sm:$0xff]  ;;  %v2026_v39 = vld [vmem:[#allocation10 + $0x148] sm:$0xff]  ;;  %v2028_v40 = vld [vmem:[#allocation10 + $0x158] sm:$0xff] }
  0x65   : > { %594 = vmatprep.subr.mxu0 %v1978_v23  ;;  %665 = vmatprep.subr.mxu1 %v1980_v24  ;;  %v2032_v41 = vld [vmem:[#allocation10 + $0x140] sm:$0xff]  ;;  %v2034_v42 = vld [vmem:[#allocation10 + $0x150] sm:$0xff]  ;;  %v2038_v43 = vld [vmem:[#allocation10 + $0x128] sm:$0xff] }
  0x66   : > { %595 = vmatpush1.msra.mxu0 %v1984_v25  ;;  %666 = vmatpush1.msra.mxu1 %v1986_v26  ;;  %v2040_v44 = vld [vmem:[#allocation10 + $0x138] sm:$0xff]  ;;  %v2044_v45 = vld [vmem:[#allocation10 + $0x120] sm:$0xff]  ;;  %v2046_v46 = vld [vmem:[#allocation10 + $0x130] sm:$0xff] }
  0x67   : > { %596 = vmatprep.subr.mxu0 %v1990_v27  ;;  %667 = vmatprep.subr.mxu1 %v1992_v28  ;;  %v2050_v47 = vld [vmem:[#allocation10 + $0x108] sm:$0xff]  ;;  %v2052_v48 = vld [vmem:[#allocation10 + $0x118] sm:$0xff]  ;;  %v2056_v49 = vld [vmem:[#allocation10 + $0x100] sm:$0xff] }
  0x68   : > { %597 = vmatpush1.msra.mxu0 %v1996_v29  ;;  %668 = vmatpush1.msra.mxu1 %v1998_v30  ;;  %v2058_v50 = vld [vmem:[#allocation10 + $0x110] sm:$0xff]  ;;  %v2062_v51 = vld [vmem:[#allocation10 + $0xe8] sm:$0xff]  ;;  %v2064_v52 = vld [vmem:[#allocation10 + $0xf8] sm:$0xff] }
  0x69   : > { %598 = vmatprep.subr.mxu0 %v2002_v31  ;;  %669 = vmatprep.subr.mxu1 %v2004_v32  ;;  %v2068_v53 = vld [vmem:[#allocation10 + $0xe0] sm:$0xff]  ;;  %v2072_v54 = vld [vmem:[#allocation10 + $0xf0] sm:$0xff]  ;;  %v271_v55 = vld [vmem:[%s1952_s14 + $0x8] sm:$0xff] }
  0x6a   : > { %599 = vmatpush1.msra.mxu0 %v2008_v33  ;;  %670 = vmatpush1.msra.mxu1 %v2010_v34  ;;  %v2077_v56 = vld [vmem:[#allocation10 + $0xc8] sm:$0xff]  ;;  %v2079_v57 = vld [vmem:[#allocation10 + $0xd8] sm:$0xff]  ;;  %v2083_v58 = vld [vmem:[#allocation10 + $0xc0] sm:$0xff] }
  0x6b   : > { %600 = vmatprep.subr.mxu0 %v2014_v35  ;;  %671 = vmatprep.subr.mxu1 %v2016_v36  ;;  %v2087_v59 = vld [vmem:[#allocation10 + $0xd0] sm:$0xff]  ;;  %v2089_v60 = vld [vmem:[#allocation10 + $0xa8] sm:$0xff]  ;;  %v2093_v61 = vld [vmem:[#allocation10 + $0xb8] sm:$0xff] }
  0x6c   : > { %601 = vmatpush1.msra.mxu0 %v2020_v37  ;;  %672 = vmatpush1.msra.mxu1 %v2022_v38  ;;  %2556 = vst [vmem:[#allocation17_spill] sm:$0xff] %v2089_v60  ;;  %2557 = vst [vmem:[#allocation18_spill] sm:$0xff] %v2093_v61  ;;  %v2097_v62 = vld [vmem:[#allocation10 + $0xa0] sm:$0xff]  ;;  %v2101_v63 = vld [vmem:[#allocation10 + $0xb0] sm:$0xff] }
  0x6d   : > { %602 = vmatprep.subr.mxu0 %v2026_v39  ;;  %673 = vmatprep.subr.mxu1 %v2028_v40  ;;  %2558 = vst [vmem:[#allocation19_spill] sm:$0xff] %v2097_v62  ;;  %2559 = vst [vmem:[#allocation20_spill] sm:$0xff] %v2101_v63  ;;  %v272_v0 = vld [vmem:[%s1952_s14 + $0x10] sm:$0xff]  ;;  %v2106_v1 = vld [vmem:[#allocation10 + $0x88] sm:$0xff] }
  0x6e   : > { %603 = vmatpush1.msra.mxu0 %v2032_v41  ;;  %674 = vmatpush1.msra.mxu1 %v2034_v42  ;;  %2560 = vst [vmem:[#allocation21_spill] sm:$0xff] %v2106_v1  ;;  %v2108_v2 = vld [vmem:[#allocation10 + $0x98] sm:$0xff]  ;;  %v2112_v3 = vld [vmem:[#allocation10 + $0x80] sm:$0xff]  ;;  %v2116_v4 = vld [vmem:[#allocation10 + $0x90] sm:$0xff] }
  0x6f   : > { %604 = vmatprep.subr.mxu0 %v2038_v43  ;;  %675 = vmatprep.subr.mxu1 %v2040_v44  ;;  %2561 = vst [vmem:[#allocation22_spill] sm:$0xff] %v2108_v2  ;;  %2562 = vst [vmem:[#allocation23_spill] sm:$0xff] %v2112_v3  ;;  %v2118_v5 = vld [vmem:[#allocation10 + $0x68] sm:$0xff]  ;;  %v2122_v6 = vld [vmem:[#allocation10 + $0x78] sm:$0xff] }
  0x70   : > { %605 = vmatpush1.msra.mxu0 %v2044_v45  ;;  %676 = vmatpush1.msra.mxu1 %v2046_v46  ;;  %2563 = vst [vmem:[#allocation24_spill] sm:$0xff] %v2116_v4  ;;  %2564 = vst [vmem:[#allocation25_spill] sm:$0xff] %v2118_v5  ;;  %v2126_v7 = vld [vmem:[#allocation10 + $0x60] sm:$0xff]  ;;  %v2130_v8 = vld [vmem:[#allocation10 + $0x70] sm:$0xff] }
  0x71   : > { %606 = vmatprep.subr.mxu0 %v2050_v47  ;;  %677 = vmatprep.subr.mxu1 %v2052_v48  ;;  %2565 = vst [vmem:[#allocation26_spill] sm:$0xff] %v2122_v6  ;;  %2566 = vst [vmem:[#allocation27_spill] sm:$0xff] %v2126_v7  ;;  %v273_v9 = vld [vmem:[%s1952_s14 + $0x18] sm:$0xff]  ;;  %v2135_v10 = vld [vmem:[#allocation10 + $0x48] sm:$0xff] }
  0x72   : > { %607 = vmatpush1.msra.mxu0 %v2056_v49  ;;  %678 = vmatpush1.msra.mxu1 %v2058_v50  ;;  %2567 = vst [vmem:[#allocation28_spill] sm:$0xff] %v2130_v8  ;;  %2568 = vst [vmem:[#allocation29_spill] sm:$0xff] %v2135_v10  ;;  %v2137_v11 = vld [vmem:[#allocation10 + $0x58] sm:$0xff]  ;;  %v2141_v12 = vld [vmem:[#allocation10 + $0x40] sm:$0xff] }
  0x73   : > { %608 = vmatprep.subr.mxu0 %v2062_v51  ;;  %679 = vmatprep.subr.mxu1 %v2064_v52  ;;  %2569 = vst [vmem:[#allocation30_spill] sm:$0xff] %v2137_v11  ;;  %2570 = vst [vmem:[#allocation31_spill] sm:$0xff] %v2141_v12  ;;  %v2145_v13 = vld [vmem:[#allocation10 + $0x50] sm:$0xff]  ;;  %v2147_v14 = vld [vmem:[#allocation10 + $0x28] sm:$0xff] }
  0x74   : > { %395 = vmatprep.mubr.f32.mxu0 %v2492_v19  ;;  %609 = vmatpush1.msra.mxu0 %v2068_v53  ;;  %2571 = vst [vmem:[#allocation32_spill] sm:$0xff] %v2145_v13  ;;  %2572 = vst [vmem:[#allocation33_spill] sm:$0xff] %v2147_v14  ;;  %v2151_v15 = vld [vmem:[#allocation10 + $0x38] sm:$0xff]  ;;  %v2155_v16 = vld [vmem:[#allocation10 + $0x20] sm:$0xff] }
  0x75   : > { %680 = vmatpush1.msra.mxu1 %v2072_v54  ;;  %1440 = vmatmul.mubr.msk.f32.gmra.mxu0 %vm312_vm0, %v271_v55  ;;  %2573 = vst [vmem:[#allocation34_spill] sm:$0xff] %v2151_v15  ;;  %2574 = vst [vmem:[#allocation35_spill] sm:$0xff] %v2155_v16  ;;  %v2157_v17 = vld [vmem:[#allocation10 + $0x30] sm:$0xff] }
  0x76   : > { %610 = vmatprep.subr.mxu0 %v2077_v56  ;;  %681 = vmatprep.subr.mxu1 %v2079_v57  ;;  %2575 = vst [vmem:[#allocation36_spill] sm:$0xff] %v2157_v17 }
  0x77   : > { %484 = vmatprep.mubr.f32.mxu1 %v2492_v19  ;;  %611 = vmatpush1.msra.mxu0 %v2083_v58 }
  0x78   : > { %682 = vmatpush1.msra.mxu1 %v2087_v59  ;;  %612 = vmatprep.subr.mxu0 %v2089_v60 }
  0x79   : > { %1444 = vmatmul.mubr.msk.f32.gmra.mxu1 %vm312_vm0, %v271_v55  ;;  %683 = vmatprep.subr.mxu1 %v2093_v61  ;;  %v2161_v55 = vld [vmem:[#allocation10 + $0x8] sm:$0xff] }
  0x7a   : > { %401 = vmatprep.mubr.f32.mxu0 %v2492_v19  ;;  %613 = vmatpush1.msra.mxu0 %v2097_v62  ;;  %2576 = vst [vmem:[#allocation37_spill] sm:$0xff] %v2161_v55 }
  0x7b   : > { %684 = vmatpush1.msra.mxu1 %v2101_v63  ;;  %1441 = vmatmul.mubr.msk.f32.gmra.mxu0 %vm312_vm0, %v272_v0 }
  0x7c   : > { %614 = vmatprep.subr.mxu0 %v2106_v1  ;;  %685 = vmatprep.subr.mxu1 %v2108_v2 }
  0x7d   : > { %490 = vmatprep.mubr.f32.mxu1 %v2492_v19  ;;  %615 = vmatpush1.msra.mxu0 %v2112_v3 }
  0x7e   : > { %686 = vmatpush1.msra.mxu1 %v2116_v4  ;;  %616 = vmatprep.subr.mxu0 %v2118_v5 }
  0x7f   : > { %1445 = vmatmul.mubr.msk.f32.gmra.mxu1 %vm312_vm0, %v272_v0  ;;  %687 = vmatprep.subr.mxu1 %v2122_v6  ;;  %v2163_v0 = vld [vmem:[#allocation10 + $0x18] sm:$0xff] }
  0x80   : > { %407 = vmatprep.mubr.f32.mxu0 %v2492_v19  ;;  %617 = vmatpush1.msra.mxu0 %v2126_v7  ;;  %2577 = vst [vmem:[#allocation38_spill] sm:$0xff] %v2163_v0 }
  0x81   : > { %688 = vmatpush1.msra.mxu1 %v2130_v8  ;;  %1442 = vmatmul.mubr.msk.f32.gmra.mxu0 %vm312_vm0, %v273_v9 }
  0x82   : > { %618 = vmatprep.subr.mxu0 %v2135_v10  ;;  %689 = vmatprep.subr.mxu1 %v2137_v11  ;;  %v2167_v11 = vld [vmem:[#allocation10] sm:$0xff] }
  0x83   : > { %496 = vmatprep.mubr.f32.mxu1 %v2492_v19  ;;  %619 = vmatpush1.msra.mxu0 %v2141_v12  ;;  %2578 = vst [vmem:[#allocation39_spill] sm:$0xff] %v2167_v11  ;;  %v2171_v19 = vld [vmem:[#allocation10 + $0x10] sm:$0xff] }
  0x84   : > { %690 = vmatpush1.msra.mxu1 %v2145_v13  ;;  %620 = vmatprep.subr.mxu0 %v2147_v14  ;;  %2579 = vst [vmem:[#allocation40_spill] sm:$0xff] %v2171_v19  ;;  %v583_v14 = vld [vmem:[#allocation2] sm:$0xff]  ;;  %v2580_v13 = vmov 0.0  }
  0x85   : > { %1446 = vmatmul.mubr.msk.f32.gmra.mxu1 %vm312_vm0, %v273_v9  ;;  %691 = vmatprep.subr.mxu1 %v2151_v15  ;;  %v2581_v9 = vld [vmem:[#allocation30_spill] sm:$0xff] }
  0x86   : > { %621 = vmatpush1.msra.mxu0 %v2155_v16  ;;  %692 = vmatpush1.msra.mxu1 %v2157_v17 }
  0x87   : > { %622 = vmatprep.subr.mxu0 %v2161_v55  ;;  %693 = vmatprep.subr.mxu1 %v2163_v0 }
  0x88   : > { %623 = vmatpush1.msra.mxu0 %v2167_v11  ;;  %656 = vmatprep.mubr.f32.mxu0 %v2580_v13 }
  0x89   : > { %694 = vmatpush1.msra.mxu1 %v2171_v19  ;;  %727 = vmatprep.mubr.f32.mxu1 %v2580_v13 }
  0x8a   : > { %657 = vmatmul.mubr.f32.vlgmr.msra.gmra.mxu0 %v583_v14  ;;  %728 = vmatmul.mubr.f32.vlgmr.msra.gmra.mxu1 %v583_v14  ;;  %v2582_v14 = vld [vmem:[#allocation32_spill] sm:$0xff] }
  0x8b   : > { %770 = vmatprep.subr.mxu0 %v1966_v18  ;;  %841 = vmatprep.subr.mxu1 %v1969_v20 }
  0x8c   : > { %771 = vmatpush1.msra.mxu0 %v1972_v21  ;;  %842 = vmatpush1.msra.mxu1 %v1974_v22 }
  0x8d   : > { %772 = vmatprep.subr.mxu0 %v1978_v23  ;;  %843 = vmatprep.subr.mxu1 %v1980_v24 }
  0x8e   : > { %773 = vmatpush1.msra.mxu0 %v1984_v25  ;;  %844 = vmatpush1.msra.mxu1 %v1986_v26 }
  0x8f   : > { %774 = vmatprep.subr.mxu0 %v1990_v27  ;;  %845 = vmatprep.subr.mxu1 %v1992_v28 }
  0x90   : > { %775 = vmatpush1.msra.mxu0 %v1996_v29  ;;  %846 = vmatpush1.msra.mxu1 %v1998_v30 }
  0x91   : > { %776 = vmatprep.subr.mxu0 %v2002_v31  ;;  %847 = vmatprep.subr.mxu1 %v2004_v32 }
  0x92   : > { %777 = vmatpush1.msra.mxu0 %v2008_v33  ;;  %848 = vmatpush1.msra.mxu1 %v2010_v34 }
  0x93   : > { %778 = vmatprep.subr.mxu0 %v2014_v35  ;;  %849 = vmatprep.subr.mxu1 %v2016_v36 }
  0x94   : > { %779 = vmatpush1.msra.mxu0 %v2020_v37  ;;  %850 = vmatpush1.msra.mxu1 %v2022_v38 }
  0x95   : > { %780 = vmatprep.subr.mxu0 %v2026_v39  ;;  %851 = vmatprep.subr.mxu1 %v2028_v40 }
  0x96   : > { %781 = vmatpush1.msra.mxu0 %v2032_v41  ;;  %852 = vmatpush1.msra.mxu1 %v2034_v42 }
  0x97   : > { %782 = vmatprep.subr.mxu0 %v2038_v43  ;;  %853 = vmatprep.subr.mxu1 %v2040_v44 }
  0x98   : > { %783 = vmatpush1.msra.mxu0 %v2044_v45  ;;  %854 = vmatpush1.msra.mxu1 %v2046_v46 }
  0x99   : > { %784 = vmatprep.subr.mxu0 %v2050_v47  ;;  %855 = vmatprep.subr.mxu1 %v2052_v48 }
  0x9a   : > { %785 = vmatpush1.msra.mxu0 %v2056_v49  ;;  %856 = vmatpush1.msra.mxu1 %v2058_v50 }
  0x9b   : > { %786 = vmatprep.subr.mxu0 %v2062_v51  ;;  %857 = vmatprep.subr.mxu1 %v2064_v52 }
  0x9c   : > { %787 = vmatpush1.msra.mxu0 %v2068_v53  ;;  %858 = vmatpush1.msra.mxu1 %v2072_v54 }
  0x9d   : > { %788 = vmatprep.subr.mxu0 %v2077_v56  ;;  %859 = vmatprep.subr.mxu1 %v2079_v57 }
  0x9e   : > { %789 = vmatpush1.msra.mxu0 %v2083_v58  ;;  %860 = vmatpush1.msra.mxu1 %v2087_v59 }
  0x9f   : > { %790 = vmatprep.subr.mxu0 %v2089_v60  ;;  %861 = vmatprep.subr.mxu1 %v2093_v61 }
  0xa0   : > { %791 = vmatpush1.msra.mxu0 %v2097_v62  ;;  %862 = vmatpush1.msra.mxu1 %v2101_v63 }
  0xa1   : > { %792 = vmatprep.subr.mxu0 %v2106_v1  ;;  %863 = vmatprep.subr.mxu1 %v2108_v2  ;;  %v2583_v2 = vld [vmem:[#allocation33_spill] sm:$0xff] }
  0xa2   : > { %793 = vmatpush1.msra.mxu0 %v2112_v3  ;;  %864 = vmatpush1.msra.mxu1 %v2116_v4 }
  0xa3   : > { %794 = vmatprep.subr.mxu0 %v2118_v5  ;;  %865 = vmatprep.subr.mxu1 %v2122_v6 }
  0xa4   : > { %795 = vmatpush1.msra.mxu0 %v2126_v7  ;;  %866 = vmatpush1.msra.mxu1 %v2130_v8 }
  0xa5   : > { %796 = vmatprep.subr.mxu0 %v2135_v10  ;;  %867 = vmatprep.subr.mxu1 %v2581_v9 }
  0xa6   : > { %797 = vmatpush1.msra.mxu0 %v2141_v12  ;;  %868 = vmatpush1.msra.mxu1 %v2582_v14 }
  0xa7   : > { %798 = vmatprep.subr.mxu0 %v2583_v2  ;;  %869 = vmatprep.subr.mxu1 %v2151_v15  ;;  %v292_v15 = vlaneseq }
  0xa8   : > { %799 = vmatpush1.msra.mxu0 %v2155_v16  ;;  %870 = vmatpush1.msra.mxu1 %v2157_v17 }
  0xa9   : > { %800 = vmatprep.subr.mxu0 %v2161_v55  ;;  %871 = vmatprep.subr.mxu1 %v2163_v0  ;;  %v293_v16 = vshrl.u32 %v292_v15, 7  ;;  %v290_v0 = vld [vmem:[%s2485_s3] sm:$0xf] }
  0xaa   : > { %801 = vmatpush1.msra.mxu0 %v2167_v11  ;;  %834 = vmatprep.mubr.f32.mxu0 %v2580_v13 }
  0xab   : > { %872 = vmatpush1.msra.mxu1 %v2171_v19  ;;  %905 = vmatprep.mubr.f32.mxu1 %v2580_v13  ;;  %v294_v17 = vsub.s32 0, %v293_v16  ;;  %v298_v11 = vsub.s32 1, %v293_v16  ;;  %v302_v9 = vsub.s32 2, %v293_v16 }
  0xac   : > { %949 = vmatprep.subr.mxu0 %v1966_v18  ;;  %1020 = vmatprep.subr.mxu1 %v1969_v20  ;;  %v306_v18 = vsub.s32 3, %v293_v16 }
  0xad   : > { %v295_v12 = vrot.slane %v290_v0, %v294_v17  ;;  %v299_v13 = vrot.slane %v290_v0, %v298_v11  ;;  %v303_v7 = vrot.slane %v290_v0, %v302_v9 }
  0xae   : > { %v307_v5 = vrot.slane %v290_v0, %v306_v18 }
 0x121   : > { %v391_v2 = vpop.f32.mrf.mxu0 }
 0x123   : > { %v480_v55 = vpop.f32.mrf.mxu1  ;;  %v393_v14 = vpop.f32.mrf.mxu0 }
 0x125   : > { %v482_v10 = vpop.f32.mrf.mxu1 }
 0x135   : > { %v397_v19 = vpop.f32.mrf.mxu0 }
 0x136   : > { %v2250_v8 = vadd.f32 %v397_v19, %v295_v12 }
 0x137   : > { %v399_v20 = vpop.f32.mrf.mxu0 }
 0x138   : > { %2584 = vst [vmem:[#allocation41_spill] sm:$0xff] %v2250_v8  ;;  %v2252_v15 = vadd.f32 %v399_v20, %v299_v13 }
 0x139   : > { %v486_v6 = vpop.f32.mrf.mxu1 }
 0x13a   : > { %2585 = vst [vmem:[#allocation42_spill] sm:$0xff] %v2252_v15  ;;  %v2254_v4 = vadd.f32 %v486_v6, %v303_v7 }
 0x13b   : > { %v403_v3 = vpop.f32.mrf.mxu0  ;;  %v488_v1 = vpop.f32.mrf.mxu1 }
 0x13c   : > { %2586 = vst [vmem:[#allocation43_spill] sm:$0xff] %v2254_v4  ;;  %v2256_v63 = vadd.f32 %v403_v3, %v295_v12  ;;  %v2258_v17 = vadd.f32 %v488_v1, %v307_v5  ;;  %v394_v4 = vadd.f32 %v393_v14, %v299_v13 }
 0x13d   : > { %v405_v62 = vpop.f32.mrf.mxu0 }
 0x13e   : > { %2587 = vst [vmem:[#allocation44_spill] sm:$0xff] %v2256_v63  ;;  %2588 = vst [vmem:[#allocation45_spill] sm:$0xff] %v2258_v17  ;;  %v2260_v61 = vadd.f32 %v405_v62, %v299_v13  ;;  %v392_v62 = vadd.f32 %v391_v2, %v295_v12 }
 0x13f   : > { %v492_v19 = vpop.f32.mrf.mxu1 }
 0x140   : > { %2589 = vst [vmem:[#allocation46_spill] sm:$0xff] %v2260_v61  ;;  %v2262_v11 = vadd.f32 %v492_v19, %v303_v7 }
 0x141   : > { %v409_v16 = vpop.f32.mrf.mxu0  ;;  %v494_v9 = vpop.f32.mrf.mxu1 }
 0x142   : > { %2590 = vst [vmem:[#allocation47_spill] sm:$0xff] %v2262_v11  ;;  %v2264_v20 = vadd.f32 %v409_v16, %v295_v12  ;;  %v2266_v15 = vadd.f32 %v494_v9, %v307_v5  ;;  %v584_v12 = vld [vmem:[#allocation3] sm:$0xff] }
 0x143   : > { %v411_v18 = vpop.f32.mrf.mxu0 }
 0x144   : > { %2591 = vst [vmem:[#allocation48_spill] sm:$0xff] %v2264_v20  ;;  %2592 = vst [vmem:[#allocation49_spill] sm:$0xff] %v2266_v15  ;;  %v2268_v6 = vadd.f32 %v411_v18, %v299_v13  ;;  %v483_v18 = vadd.f32 %v482_v10, %v307_v5  ;;  %v481_v15 = vadd.f32 %v480_v55, %v303_v7 }
 0x145   : > { %v498_v0 = vpop.f32.mrf.mxu1 }
 0x146   : > { %2593 = vst [vmem:[#allocation50_spill] sm:$0xff] %v2268_v6  ;;  %v2270_v3 = vadd.f32 %v498_v0, %v303_v7 }
 0x147   : > { %v500_v1 = vpop.f32.mrf.mxu1 }
 0x148   : > { %2594 = vst [vmem:[#allocation51_spill] sm:$0xff] %v2270_v3  ;;  %v2272_v63 = vadd.f32 %v500_v1, %v307_v5 }
 0x14a   : > { %2595 = vst [vmem:[#allocation52_spill] sm:$0xff] %v2272_v63  ;;  %v658_v61 = vpop.f32.mrf.mxu0  ;;  %v729_v16 = vpop.f32.mrf.mxu1 }
 0x14b   : > { %v734_v19 = vadd.f32 %v658_v61, %v392_v62  ;;  %v736_v60 = vadd.f32 %v729_v16, %v481_v15  ;;  %v2602_v62 = vld [vmem:[#allocation23_spill] sm:$0xff]  ;;  %v2604_v16 = vld [vmem:[#allocation25_spill] sm:$0xff] }
 0x14c   : > { %v660_v11 = vpop.f32.mrf.mxu0  ;;  %v731_v20 = vpop.f32.mrf.mxu1 }
 0x14d   : > { %v1447_v17 = vmul.f32 -1.442695, %v734_v19  ;;  %v735_v8 = vadd.f32 %v660_v11, %v394_v4  ;;  %v737_v6 = vadd.f32 %v731_v20, %v483_v18  ;;  %v2598_v11 = vld [vmem:[#allocation19_spill] sm:$0xff]  ;;  %v2599_v20 = vld [vmem:[#allocation20_spill] sm:$0xff] }
 0x14e   : > { %v2603_v19 = vld [vmem:[#allocation24_spill] sm:$0xff]  ;;  %v2606_v18 = vld [vmem:[#allocation27_spill] sm:$0xff] }
 0x14f   : > { %1560 = vpow2.f32 %v1447_v17  ;;  %v1448_v9 = vmul.f32 -1.442695, %v735_v8  ;;  %v1449_v0 = vmul.f32 -1.442695, %v737_v6  ;;  %v2600_v6 = vld [vmem:[#allocation21_spill] sm:$0xff] }
 0x151   : > { %1562 = vpow2.f32 %v1448_v9  ;;  %v2605_v9 = vld [vmem:[#allocation26_spill] sm:$0xff] }
 0x152   : > { %1564 = vpow2.f32 %v1449_v0  ;;  %v2607_v0 = vld [vmem:[#allocation28_spill] sm:$0xff] }
 0x15c   : > { %v1561_v3 = vpop.eup %1560 }
 0x15d   : > { %v741_v1 = vadd.f32 1.0, %v1561_v3  ;;  %v2601_v3 = vld [vmem:[#allocation22_spill] sm:$0xff] }
 0x15e   : > { %v1563_v63 = vpop.eup %1562 }
 0x15f   : > { %1566 = vrcp.f32 %v741_v1  ;;  %v747_v2 = vadd.f32 1.0, %v1563_v63  ;;  %v1565_v61 = vpop.eup %1564  ;;  %v2597_v63 = vld [vmem:[#allocation18_spill] sm:$0xff]  ;;  %v2608_v1 = vld [vmem:[#allocation29_spill] sm:$0xff] }
 0x160   : > { %1568 = vtanh.f32 %v736_v60  ;;  %v754_v14 = vadd.f32 1.0, %v1565_v61  ;;  %v2596_v60 = vld [vmem:[#allocation17_spill] sm:$0xff]  ;;  %v2610_v61 = vld [vmem:[#allocation31_spill] sm:$0xff] }
 0x161   : > { %1570 = vrcp.f32 %v747_v2  ;;  %v2609_v2 = vld [vmem:[#allocation30_spill] sm:$0xff] }
 0x162   : > { %1572 = vrcp.f32 %v754_v14  ;;  %v2615_v14 = vld [vmem:[#allocation36_spill] sm:$0xff] }
 0x16c   : > { %v1567_v4 = vpop.eup %1566 }
 0x16d   : > { %v1569_v8 = vpop.eup %1568 }
 0x16e   : > { %v1571_v13 = vpop.eup %1570  ;;  %v758_v5 = vmul.f32 %v1569_v8, %v1567_v4  ;;  %v2611_v4 = vld [vmem:[#allocation32_spill] sm:$0xff]  ;;  %v2613_v8 = vld [vmem:[#allocation34_spill] sm:$0xff] }
 0x16f   : > { %v757_v10 = vmul.f32 %v1571_v13, %v584_v12  ;;  %v1573_v55 = vpop.eup %1572  ;;  %v2612_v12 = vld [vmem:[#allocation33_spill] sm:$0xff]  ;;  %v2614_v13 = vld [vmem:[#allocation35_spill] sm:$0xff] }
 0x171   : > { %v2274_v7 = vadd.f32 %v758_v5, %v757_v10  ;;  %v2616_v5 = vld [vmem:[#allocation37_spill] sm:$0xff]  ;;  %v2617_v10 = vld [vmem:[#allocation38_spill] sm:$0xff] }
 0x173   : > { %1574 = vtanh.f32 %v2274_v7 }
 0x180   : > { %v1575_v15 = vpop.eup %1574 }
 0x181   : > { %v761_v17 = vmul.f32 %v1575_v15, %v1573_v55  ;;  %v2618_v55 = vld [vmem:[#allocation39_spill] sm:$0xff]  ;;  %v2619_v15 = vmov 0.0  }
 0x183   : > { %762 = vst [vmem:[%s1962_s27] sm:$0xff] %v761_v17  ;;  %835 = vmatmul.mubr.f32.vlgmr.msra.gmra.mxu0 %v761_v17  ;;  %906 = vmatmul.mubr.f32.vlgmr.msra.gmra.mxu1 %v761_v17  ;;  %v2620_v17 = vld [vmem:[#allocation40_spill] sm:$0xff] }
 0x184   : > { %950 = vmatpush1.msra.mxu0 %v1972_v21  ;;  %1021 = vmatpush1.msra.mxu1 %v1974_v22 }
 0x185   : > { %951 = vmatprep.subr.mxu0 %v1978_v23  ;;  %1022 = vmatprep.subr.mxu1 %v1980_v24 }
 0x186   : > { %952 = vmatpush1.msra.mxu0 %v1984_v25  ;;  %1023 = vmatpush1.msra.mxu1 %v1986_v26 }
 0x187   : > { %953 = vmatprep.subr.mxu0 %v1990_v27  ;;  %1024 = vmatprep.subr.mxu1 %v1992_v28 }
 0x188   : > { %954 = vmatpush1.msra.mxu0 %v1996_v29  ;;  %1025 = vmatpush1.msra.mxu1 %v1998_v30 }
 0x189   : > { %955 = vmatprep.subr.mxu0 %v2002_v31  ;;  %1026 = vmatprep.subr.mxu1 %v2004_v32 }
 0x18a   : > { %956 = vmatpush1.msra.mxu0 %v2008_v33  ;;  %1027 = vmatpush1.msra.mxu1 %v2010_v34 }
 0x18b   : > { %957 = vmatprep.subr.mxu0 %v2014_v35  ;;  %1028 = vmatprep.subr.mxu1 %v2016_v36 }
 0x18c   : > { %958 = vmatpush1.msra.mxu0 %v2020_v37  ;;  %1029 = vmatpush1.msra.mxu1 %v2022_v38 }
 0x18d   : > { %959 = vmatprep.subr.mxu0 %v2026_v39  ;;  %1030 = vmatprep.subr.mxu1 %v2028_v40 }
 0x18e   : > { %960 = vmatpush1.msra.mxu0 %v2032_v41  ;;  %1031 = vmatpush1.msra.mxu1 %v2034_v42 }
 0x18f   : > { %961 = vmatprep.subr.mxu0 %v2038_v43  ;;  %1032 = vmatprep.subr.mxu1 %v2040_v44 }
 0x190   : > { %962 = vmatpush1.msra.mxu0 %v2044_v45  ;;  %1033 = vmatpush1.msra.mxu1 %v2046_v46 }
 0x191   : > { %963 = vmatprep.subr.mxu0 %v2050_v47  ;;  %1034 = vmatprep.subr.mxu1 %v2052_v48 }
 0x192   : > { %964 = vmatpush1.msra.mxu0 %v2056_v49  ;;  %1035 = vmatpush1.msra.mxu1 %v2058_v50 }
 0x193   : > { %965 = vmatprep.subr.mxu0 %v2062_v51  ;;  %1036 = vmatprep.subr.mxu1 %v2064_v52 }
 0x194   : > { %966 = vmatpush1.msra.mxu0 %v2068_v53  ;;  %1037 = vmatpush1.msra.mxu1 %v2072_v54 }
 0x195   : > { %967 = vmatprep.subr.mxu0 %v2077_v56  ;;  %1038 = vmatprep.subr.mxu1 %v2079_v57 }
 0x196   : > { %968 = vmatpush1.msra.mxu0 %v2083_v58  ;;  %1039 = vmatpush1.msra.mxu1 %v2087_v59 }
 0x197   : > { %969 = vmatprep.subr.mxu0 %v2596_v60  ;;  %1040 = vmatprep.subr.mxu1 %v2597_v63 }
 0x198   : > { %970 = vmatpush1.msra.mxu0 %v2598_v11  ;;  %1041 = vmatpush1.msra.mxu1 %v2599_v20 }
 0x199   : > { %971 = vmatprep.subr.mxu0 %v2600_v6  ;;  %1042 = vmatprep.subr.mxu1 %v2601_v3 }
 0x19a   : > { %972 = vmatpush1.msra.mxu0 %v2602_v62  ;;  %1043 = vmatpush1.msra.mxu1 %v2603_v19 }
 0x19b   : > { %973 = vmatprep.subr.mxu0 %v2604_v16  ;;  %1044 = vmatprep.subr.mxu1 %v2605_v9  ;;  %v2626_v9 = vld [vmem:[#allocation43_spill] sm:$0xff] }
 0x19c   : > { %974 = vmatpush1.msra.mxu0 %v2606_v18  ;;  %1045 = vmatpush1.msra.mxu1 %v2607_v0  ;;  %v2625_v18 = vld [vmem:[#allocation45_spill] sm:$0xff] }
 0x19d   : > { %975 = vmatprep.subr.mxu0 %v2608_v1  ;;  %1046 = vmatprep.subr.mxu1 %v2609_v2 }
 0x19e   : > { %976 = vmatpush1.msra.mxu0 %v2610_v61  ;;  %1047 = vmatpush1.msra.mxu1 %v2611_v4  ;;  %v2621_v4 = vld [vmem:[#allocation15_spill] sm:$0xff] }
 0x19f   : > { %977 = vmatprep.subr.mxu0 %v2612_v12  ;;  %1048 = vmatprep.subr.mxu1 %v2613_v8  ;;  %v2622_v12 = vld [vmem:[#allocation16_spill] sm:$0xff] }
 0x1a0   : > { %978 = vmatpush1.msra.mxu0 %v2614_v13  ;;  %1049 = vmatpush1.msra.mxu1 %v2615_v14  ;;  %v2623_v13 = vld [vmem:[#allocation41_spill] sm:$0xff] }
 0x1a1   : > { %979 = vmatprep.subr.mxu0 %v2616_v5  ;;  %1050 = vmatprep.subr.mxu1 %v2617_v10  ;;  %v2624_v5 = vld [vmem:[#allocation42_spill] sm:$0xff] }
 0x1a2   : > { %980 = vmatpush1.msra.mxu0 %v2618_v55  ;;  %1013 = vmatprep.mubr.f32.mxu0 %v2619_v15 }
 0x1a3   : > { %1051 = vmatpush1.msra.mxu1 %v2620_v17  ;;  %1084 = vmatprep.mubr.f32.mxu1 %v2619_v15 }
 0x1a4   : > { %1128 = vmatprep.subr.mxu0 %v2621_v4  ;;  %1199 = vmatprep.subr.mxu1 %v2622_v12 }
 0x243   : > { %v836_v8 = vpop.f32.mrf.mxu0  ;;  %v907_v10 = vpop.f32.mrf.mxu1 }
 0x244   : > { %v912_v61 = vadd.f32 %v836_v8, %v2623_v13  ;;  %v914_v15 = vadd.f32 %v907_v10, %v2626_v9 }
 0x245   : > { %v838_v14 = vpop.f32.mrf.mxu0  ;;  %v909_v0 = vpop.f32.mrf.mxu1 }
 0x246   : > { %v1450_v2 = vmul.f32 -1.442695, %v912_v61  ;;  %v913_v1 = vadd.f32 %v838_v14, %v2624_v5  ;;  %v915_v17 = vadd.f32 %v909_v0, %v2625_v18 }
 0x248   : > { %1576 = vpow2.f32 %v1450_v2  ;;  %v1451_v55 = vmul.f32 -1.442695, %v913_v1  ;;  %v1452_v16 = vmul.f32 -1.442695, %v915_v17  ;;  %v2649_v17 = vld [vmem:[#allocation48_spill] sm:$0xff] }
 0x24a   : > { %1578 = vpow2.f32 %v1451_v55 }
 0x24b   : > { %1580 = vtanh.f32 %v914_v15 }
 0x24c   : > { %1582 = vpow2.f32 %v1452_v16 }
 0x255   : > { %v1577_v4 = vpop.eup %1576 }
 0x256   : > { %v919_v19 = vadd.f32 1.0, %v1577_v4 }
 0x257   : > { %v1579_v12 = vpop.eup %1578 }
 0x258   : > { %1584 = vrcp.f32 %v919_v19  ;;  %v925_v61 = vadd.f32 1.0, %v1579_v12  ;;  %v1581_v8 = vpop.eup %1580 }
 0x259   : > { %v1583_v2 = vpop.eup %1582 }
 0x25a   : > { %1586 = vrcp.f32 %v925_v61  ;;  %v932_v5 = vadd.f32 1.0, %v1583_v2 }
 0x25c   : > { %1588 = vrcp.f32 %v932_v5  ;;  %v2651_v5 = vld [vmem:[#allocation52_spill] sm:$0xff] }
 0x265   : > { %v1585_v13 = vpop.eup %1584 }
 0x266   : > { %v936_v1 = vmul.f32 %v1585_v13, %v1581_v8  ;;  %v2650_v8 = vld [vmem:[#allocation50_spill] sm:$0xff] }
 0x267   : > { %v1587_v14 = vpop.eup %1586 }
 0x268   : > { %v935_v18 = vmul.f32 %v1587_v14, %v2274_v7 }
 0x269   : > { %v1589_v9 = vpop.eup %1588 }
 0x26a   : > { %v2349_v0 = vadd.f32 %v936_v1, %v935_v18 }
 0x26c   : > { %1590 = vtanh.f32 %v2349_v0 }
 0x279   : > { %v1591_v10 = vpop.eup %1590 }
 0x27a   : > { %v939_v16 = vmul.f32 %v1591_v10, %v1589_v9 }
 0x27c   : > { %1453 = vst [vmem:[%s1962_s27 + $0x8] sm:$0xff] %v939_v16  ;;  %1014 = vmatmul.mubr.f32.vlgmr.msra.gmra.mxu0 %v939_v16  ;;  %1085 = vmatmul.mubr.f32.vlgmr.msra.gmra.mxu1 %v939_v16 }
 0x27d   : > { %1129 = vmatpush1.msra.mxu0 %v1972_v21  ;;  %1200 = vmatpush1.msra.mxu1 %v1974_v22  ;;  %v2627_v21 = vld [vmem:[#allocation24_spill] sm:$0xff]  ;;  %v2628_v22 = vld [vmem:[#allocation25_spill] sm:$0xff] }
 0x27e   : > { %1130 = vmatprep.subr.mxu0 %v1978_v23  ;;  %1201 = vmatprep.subr.mxu1 %v1980_v24  ;;  %v2629_v23 = vld [vmem:[#allocation26_spill] sm:$0xff]  ;;  %v2630_v24 = vld [vmem:[#allocation27_spill] sm:$0xff] }
 0x27f   : > { %1131 = vmatpush1.msra.mxu0 %v1984_v25  ;;  %1202 = vmatpush1.msra.mxu1 %v1986_v26  ;;  %v2631_v25 = vld [vmem:[#allocation28_spill] sm:$0xff]  ;;  %v2632_v26 = vld [vmem:[#allocation29_spill] sm:$0xff] }
 0x280   : > { %1132 = vmatprep.subr.mxu0 %v1990_v27  ;;  %1203 = vmatprep.subr.mxu1 %v1992_v28  ;;  %v2633_v27 = vld [vmem:[#allocation30_spill] sm:$0xff]  ;;  %v2634_v28 = vld [vmem:[#allocation31_spill] sm:$0xff] }
 0x281   : > { %1133 = vmatpush1.msra.mxu0 %v1996_v29  ;;  %1204 = vmatpush1.msra.mxu1 %v1998_v30  ;;  %v2635_v29 = vld [vmem:[#allocation32_spill] sm:$0xff]  ;;  %v2636_v30 = vld [vmem:[#allocation33_spill] sm:$0xff] }
 0x282   : > { %1134 = vmatprep.subr.mxu0 %v2002_v31  ;;  %1205 = vmatprep.subr.mxu1 %v2004_v32  ;;  %v2637_v31 = vld [vmem:[#allocation34_spill] sm:$0xff]  ;;  %v2638_v32 = vld [vmem:[#allocation35_spill] sm:$0xff] }
 0x283   : > { %1135 = vmatpush1.msra.mxu0 %v2008_v33  ;;  %1206 = vmatpush1.msra.mxu1 %v2010_v34  ;;  %v2639_v33 = vld [vmem:[#allocation36_spill] sm:$0xff]  ;;  %v2640_v34 = vld [vmem:[#allocation37_spill] sm:$0xff] }
 0x284   : > { %1136 = vmatprep.subr.mxu0 %v2014_v35  ;;  %1207 = vmatprep.subr.mxu1 %v2016_v36  ;;  %v2641_v35 = vld [vmem:[#allocation38_spill] sm:$0xff]  ;;  %v2642_v36 = vld [vmem:[#allocation39_spill] sm:$0xff] }
 0x285   : > { %1137 = vmatpush1.msra.mxu0 %v2020_v37  ;;  %1208 = vmatpush1.msra.mxu1 %v2022_v38  ;;  %v2643_v37 = vmov 0.0   ;;  %v2644_v38 = vld [vmem:[#allocation40_spill] sm:$0xff] }
 0x286   : > { %1138 = vmatprep.subr.mxu0 %v2026_v39  ;;  %1209 = vmatprep.subr.mxu1 %v2028_v40  ;;  %v2645_v40 = vld [vmem:[#allocation44_spill] sm:$0xff] }
 0x287   : > { %1139 = vmatpush1.msra.mxu0 %v2032_v41  ;;  %1210 = vmatpush1.msra.mxu1 %v2034_v42 }
 0x288   : > { %1140 = vmatprep.subr.mxu0 %v2038_v43  ;;  %1211 = vmatprep.subr.mxu1 %v2040_v44  ;;  %v2646_v44 = vld [vmem:[#allocation46_spill] sm:$0xff] }
 0x289   : > { %1141 = vmatpush1.msra.mxu0 %v2044_v45  ;;  %1212 = vmatpush1.msra.mxu1 %v2046_v46 }
 0x28a   : > { %1142 = vmatprep.subr.mxu0 %v2050_v47  ;;  %1213 = vmatprep.subr.mxu1 %v2052_v48 }
 0x28b   : > { %1143 = vmatpush1.msra.mxu0 %v2056_v49  ;;  %1214 = vmatpush1.msra.mxu1 %v2058_v50  ;;  %v2647_v49 = vld [vmem:[#allocation49_spill] sm:$0xff] }
 0x28c   : > { %1144 = vmatprep.subr.mxu0 %v2062_v51  ;;  %1215 = vmatprep.subr.mxu1 %v2064_v52  ;;  %v2648_v51 = vld [vmem:[#allocation47_spill] sm:$0xff] }
 0x28d   : > { %1145 = vmatpush1.msra.mxu0 %v2068_v53  ;;  %1216 = vmatpush1.msra.mxu1 %v2072_v54 }
 0x28e   : > { %1146 = vmatprep.subr.mxu0 %v2077_v56  ;;  %1217 = vmatprep.subr.mxu1 %v2079_v57 }
 0x28f   : > { %1147 = vmatpush1.msra.mxu0 %v2083_v58  ;;  %1218 = vmatpush1.msra.mxu1 %v2087_v59 }
 0x290   : > { %1148 = vmatprep.subr.mxu0 %v2596_v60  ;;  %1219 = vmatprep.subr.mxu1 %v2597_v63 }
 0x291   : > { %1149 = vmatpush1.msra.mxu0 %v2598_v11  ;;  %1220 = vmatpush1.msra.mxu1 %v2599_v20 }
 0x292   : > { %1150 = vmatprep.subr.mxu0 %v2600_v6  ;;  %1221 = vmatprep.subr.mxu1 %v2601_v3 }
 0x293   : > { %1151 = vmatpush1.msra.mxu0 %v2602_v62  ;;  %1222 = vmatpush1.msra.mxu1 %v2627_v21 }
 0x294   : > { %1152 = vmatprep.subr.mxu0 %v2628_v22  ;;  %1223 = vmatprep.subr.mxu1 %v2629_v23 }
 0x295   : > { %1153 = vmatpush1.msra.mxu0 %v2630_v24  ;;  %1224 = vmatpush1.msra.mxu1 %v2631_v25 }
 0x296   : > { %1154 = vmatprep.subr.mxu0 %v2632_v26  ;;  %1225 = vmatprep.subr.mxu1 %v2633_v27 }
 0x297   : > { %1155 = vmatpush1.msra.mxu0 %v2634_v28  ;;  %1226 = vmatpush1.msra.mxu1 %v2635_v29 }
 0x298   : > { %1156 = vmatprep.subr.mxu0 %v2636_v30  ;;  %1227 = vmatprep.subr.mxu1 %v2637_v31 }
 0x299   : > { %1157 = vmatpush1.msra.mxu0 %v2638_v32  ;;  %1228 = vmatpush1.msra.mxu1 %v2639_v33 }
 0x29a   : > { %1158 = vmatprep.subr.mxu0 %v2640_v34  ;;  %1229 = vmatprep.subr.mxu1 %v2641_v35 }
 0x29b   : > { %1159 = vmatpush1.msra.mxu0 %v2642_v36  ;;  %1192 = vmatprep.mubr.f32.mxu0 %v2643_v37 }
 0x29c   : > { %1230 = vmatpush1.msra.mxu1 %v2644_v38  ;;  %1263 = vmatprep.mubr.f32.mxu1 %v2643_v37 }
 0x33c   : > { %v1015_v39 = vpop.f32.mrf.mxu0  ;;  %v1086_v46 = vpop.f32.mrf.mxu1 }
 0x33d   : > { %v1091_v41 = vadd.f32 %v1015_v39, %v2645_v40  ;;  %v1093_v52 = vadd.f32 %v1086_v46, %v2648_v51 }
 0x33e   : > { %v1017_v42 = vpop.f32.mrf.mxu0  ;;  %v1088_v48 = vpop.f32.mrf.mxu1 }
 0x33f   : > { %v1454_v43 = vmul.f32 -1.442695, %v1091_v41  ;;  %v1092_v45 = vadd.f32 %v1017_v42, %v2646_v44  ;;  %v1094_v50 = vadd.f32 %v1088_v48, %v2647_v49 }
 0x341   : > { %1592 = vpow2.f32 %v1454_v43  ;;  %v1455_v47 = vmul.f32 -1.442695, %v1092_v45  ;;  %v1456_v53 = vmul.f32 -1.442695, %v1094_v50 }
 0x343   : > { %1594 = vpow2.f32 %v1455_v47 }
 0x344   : > { %1596 = vtanh.f32 %v1093_v52 }
 0x345   : > { %1598 = vpow2.f32 %v1456_v53 }
 0x34e   : > { %v1593_v54 = vpop.eup %1592 }
 0x34f   : > { %v1098_v56 = vadd.f32 1.0, %v1593_v54 }
 0x350   : > { %v1595_v57 = vpop.eup %1594 }
 0x351   : > { %1600 = vrcp.f32 %v1098_v56  ;;  %v1104_v58 = vadd.f32 1.0, %v1595_v57  ;;  %v1597_v59 = vpop.eup %1596 }
 0x352   : > { %v1599_v7 = vpop.eup %1598 }
 0x353   : > { %1602 = vrcp.f32 %v1104_v58  ;;  %v1111_v20 = vadd.f32 1.0, %v1599_v7 }
 0x355   : > { %1604 = vrcp.f32 %v1111_v20 }
 0x35e   : > { %v1601_v60 = vpop.eup %1600 }
 0x35f   : > { %v1115_v63 = vmul.f32 %v1601_v60, %v1597_v59 }
 0x360   : > { %v1603_v11 = vpop.eup %1602 }
 0x361   : > { %v1114_v6 = vmul.f32 %v1603_v11, %v2349_v0  ;;  %v2652_v0 = vld [vmem:[#allocation51_spill] sm:$0xff] }
 0x362   : > { %v1605_v62 = vpop.eup %1604 }
 0x363   : > { %v1116_v3 = vadd.f32 %v1115_v63, %v1114_v6 }
 0x365   : > { %1606 = vtanh.f32 %v1116_v3 }
 0x372   : > { %v1607_v19 = vpop.eup %1606 }
 0x373   : > { %v1118_v55 = vmul.f32 %v1607_v19, %v1605_v62 }
 0x375   : > { %1457 = vst [vmem:[%s1962_s27 + $0x10] sm:$0xff] %v1118_v55  ;;  %1193 = vmatmul.mubr.f32.vlgmr.msra.gmra.mxu0 %v1118_v55  ;;  %1264 = vmatmul.mubr.f32.vlgmr.msra.gmra.mxu1 %v1118_v55 }
 0x435   : > { %v1194_v15 = vpop.f32.mrf.mxu0  ;;  %v1265_v13 = vpop.f32.mrf.mxu1 }
 0x436   : > { %v1270_v4 = vadd.f32 %v1194_v15, %v2649_v17  ;;  %v1272_v9 = vadd.f32 %v1265_v13, %v2652_v0 }
 0x437   : > { %v1196_v12 = vpop.f32.mrf.mxu0  ;;  %v1267_v14 = vpop.f32.mrf.mxu1 }
 0x438   : > { %v1458_v61 = vmul.f32 -1.442695, %v1270_v4  ;;  %v1271_v2 = vadd.f32 %v1196_v12, %v2650_v8  ;;  %v1273_v18 = vadd.f32 %v1267_v14, %v2651_v5 }
 0x43a   : > { %1608 = vpow2.f32 %v1458_v61  ;;  %v1459_v1 = vmul.f32 -1.442695, %v1271_v2  ;;  %v1460_v10 = vmul.f32 -1.442695, %v1273_v18 }
 0x43c   : > { %1610 = vpow2.f32 %v1459_v1 }
 0x43d   : > { %1612 = vtanh.f32 %v1272_v9 }
 0x43e   : > { %1614 = vpow2.f32 %v1460_v10 }
 0x447   : > { %v1609_v16 = vpop.eup %1608 }
 0x448   : > { %v1277_v21 = vadd.f32 1.0, %v1609_v16 }
 0x449   : > { %v1611_v22 = vpop.eup %1610 }
 0x44a   : > { %1616 = vrcp.f32 %v1277_v21  ;;  %v1283_v23 = vadd.f32 1.0, %v1611_v22  ;;  %v1613_v24 = vpop.eup %1612 }
 0x44b   : > { %v1615_v25 = vpop.eup %1614 }
 0x44c   : > { %1618 = vrcp.f32 %v1283_v23  ;;  %v1290_v29 = vadd.f32 1.0, %v1615_v25 }
 0x44e   : > { %1620 = vrcp.f32 %v1290_v29 }
 0x457   : > { %v1617_v26 = vpop.eup %1616 }
 0x458   : > { %v1294_v27 = vmul.f32 %v1617_v26, %v1613_v24 }
 0x459   : > { %v1619_v28 = vpop.eup %1618 }
 0x45a   : > { %v1293_v30 = vmul.f32 %v1619_v28, %v1116_v3 }
 0x45b   : > { %v1621_v32 = vpop.eup %1620 }
 0x45c   : > { %v1295_v31 = vadd.f32 %v1294_v27, %v1293_v30 }
 0x45e   : > { %1622 = vtanh.f32 %v1295_v31  ;;  %1301 = vst [vmem:[#allocation3] sm:$0xff] %v1295_v31 }
 0x46b   : > { %v1623_v33 = vpop.eup %1622 }
 0x46c   : > { %v1297_v34 = vmul.f32 %v1623_v33, %v1621_v32 }
 0x46e   : > { %1300 = vst [vmem:[#allocation2] sm:$0xff] %v1297_v34  ;;  %1461 = vst [vmem:[%s1962_s27 + $0x18] sm:$0xff] %v1297_v34 }
 0x46f   : > { %1717 = shalt.err (!%p1714_p0)
}
 0x470   : > { %s1718_s9 = scalar_lea.hbm %s2432_s22, 512  ;;  %s1722_s27 = scalar_lea.hbm %s2486_s4, 1536 }
 0x471   : > { %p1719_p1 = scmp.ne.s32.totalorder %s2432_s22, %s1718_s9  ;;  %p1723_p11 = scmp.lt.s32.totalorder %s2432_s22, %s2486_s4 }
 0x472   : > { %p1724_p5 = scmp.lt.s32.totalorder %s1722_s27, %s1718_s9 }
 0x473   : > { %p1720_p4 = pnand %p1719_p1, %p1921_p7 }
 0x474   : > { %p1725_p8 = por %p1724_p5, %p1723_p11 }
 0x475   : > { %p1721_p6 = pneg %p1720_p4 }
 0x477   : > { %p1726_p9 = pnand %p1725_p8, %p1721_p6 }
 0x479   : > { %1729 = shalt.err (!%p1726_p9)
}
 0x47a   : > { %s1800_s10 = smov 128   ;;  %s1801_s24 = smov 8  }
 0x47b   : > { %1479 = dma.vmem_to_hbm [thread:$0]  (%p1921_p7), %s2434_s12, 512, %s2432_s22, %s1303_s29, %s1800_s10, %s1800_s10, %s1801_s24  }
 0x47c PF: > { %p1501_p10 = scmp.ge.s32.totalorder %s1788_s20, 2  ;;  %s1332_s13 = sand.u32 1, %s1768_s15  }
 0x47d   : > { %p2653_p2 = scmp.ne.s32.totalorder %s2547_s26, 0  ;;  %s1333_s6 = scalar_lea.sflag [#allocation7], %s1332_s13 }
 0x47f   : > { %p1493_p12 = pnand %p1501_p10, %p2653_p2 }
 0x481   : > { %p1494_p13 = pneg %p1493_p12 }
 0x483   : > { %1763 = dma.done.wait (%p1494_p13), %s1333_s6, 512  }
 0x484   : > { %1765 = vsyncadd (%p1494_p13), %s1333_s6, 4294966784  ;;  %s21_s20 = sadd.s32 1, %s1788_s20   ;;  %s2654_s15 = smov %s1772_s16 }
 0x485   : > { %p18_p3 = scmp.ge.s32.totalorder %s21_s20, 5   ;;  %s2655_s16 = smov %s1776_s17 }
 0x486   : > { %s2656_s17 = smov %s1930_s7  ;;  %s2657_s18 = smov %s1784_s19 }
 0x487   : > { %s2658_s19 = smov %s2660_s21  ;;  %20 = sbr.rel (!%p18_p3) target bundleno = 7 (0x7), region = 100 }
 0x48c   :  { %1338 = vsyncpa [#allocation6], 1 }
 0x48d   :  { %1340 = vsyncpa [#allocation6 + $0x1], 1 }
 0x48e   :  { %1341 = vsyncpa [#allocation9], 1 }
 0x48f   :  { %1342 = vsyncpa [#allocation7], 1 }
 0x490   :  { %1344 = vsyncpa [#allocation7 + $0x1], 1 }

</bundles_post_ra>
